<compile_context>
chip_gen: v6e
topology: v6e:2x2x1
jax: 0.10.0
libtpu: 0.0.40
codegen_flags: <defaults>
</compile_context>

<pallas_src>
import functools

import jax
import jax.numpy as jnp
from jax.experimental import pallas as pl
from jax.experimental.pallas import tpu as pltpu

PATCH_SIZE = 3


# ----------------------------------------------------------------------------
# Glue (plain JAX): build_extended_map + build_pts_set_for_flann
# ----------------------------------------------------------------------------
def build_pts_set(x, patch_size=PATCH_SIZE, points_major=True):
    """x: (n, c, h, w) -> (n, h*w, c*p*p) if points_major else (n, c*p*p, h*w)."""
    n, c, h, w = x.shape
    step = patch_size // 2
    # build_extended_map == replicate ("edge") padding of the spatial dims.
    y = jnp.pad(x, ((0, 0), (0, 0), (step, step), (step, step)), mode="edge")
    slabs = [y[:, :, i:i + h, j:j + w]
             for i in range(patch_size) for j in range(patch_size)]
    ex = jnp.stack(slabs, axis=2)                                  # (n, c, p*p, h, w)
    pts = ex.reshape(n, c * patch_size * patch_size, h * w).astype(jnp.float32)
    if points_major:
        return jnp.transpose(pts, (0, 2, 1))                       # (n, h*w, D)
    return pts                                                     # (n, D, h*w) K-major


# ----------------------------------------------------------------------------
# Pallas kernel: resident target block, in-kernel chunk loop, min/argmin
# ----------------------------------------------------------------------------
def _nn_kernel(qaug_ref, paug_ref, rown_ref, idx_ref, nnd_ref, *, tile_t, n_chunks):
    q = qaug_ref[0]                                   # (tile_q, D+1) query points (+1)
    tq = q.shape[0]
    int_max = jnp.iinfo(jnp.int32).max

    def chunk(t, carry):
        minv, mini = carry
        if n_chunks == 1:
            p = paug_ref[0]                           # (D+1, T) whole resident block
            base = 0
        else:
            start = pl.multiple_of(t * tile_t, tile_t)
            p = paug_ref[0, :, pl.ds(start, tile_t)]  # (D+1, tile_t)
            base = t * tile_t
        # core[i, j] = -2 * q_pts[i].pts[j] + ||q_pts[j]||^2   (single MXU matmul)
        core = jnp.dot(q, p, preferred_element_type=jnp.float32)   # (tile_q, tile_t)
        blk_min = jnp.min(core, axis=1, keepdims=True)             # (tile_q, 1)
        # 1-vreg iota row; broadcast happens inside the select.
        ids = jax.lax.broadcasted_iota(jnp.int32, (1, tile_t), 1) + base
        # first-occurrence argmin within the chunk (finite inputs assumed; all-NaN
        # rows would yield int_max — same behaviour as the reference quirk).
        blk_arg = jnp.min(jnp.where(core == blk_min, ids, int_max),
                          axis=1, keepdims=True)                   # (tile_q, 1)
        better = blk_min < minv          # strict < keeps the earlier chunk on ties
        return (jnp.where(better, blk_min, minv),
                jnp.where(better, blk_arg, mini))

    init = (jnp.full((tq, 1), jnp.inf, dtype=jnp.float32),
            jnp.zeros((tq, 1), dtype=jnp.int32))
    if n_chunks == 1:
        minv, mini = chunk(0, init)
    else:
        minv, mini = jax.lax.fori_loop(0, n_chunks, chunk, init)

    idx_ref[0] = mini
    # query-row norm ||pts[i]||^2 does not affect the argmin; add it once here.
    nnd_ref[0] = minv + rown_ref[0]


def patch_match_forward(source_map, target_map, patch_size=PATCH_SIZE,
                        tile_q=512, tile_t=512):
    n, c, sh, sw = source_map.shape
    _, _, th, tw = target_map.shape
    Q, T = sh * sw, th * tw
    assert Q == T, "reference pairwise_dist broadcasting requires #src == #tgt points"
    D = c * patch_size * patch_size
    D_aug = D + 1

    q_pts = build_pts_set(source_map, patch_size)                      # (n, Q, D)
    pts_km = build_pts_set(target_map, patch_size, points_major=False)  # (n, D, T)

    # rown[i] = ||pts[i]||^2 (target pts, indexed by query row i) -- bug-compatible.
    rown = jnp.sum(pts_km * pts_km, axis=1)[..., None]                 # (n, T, 1)
    # coln[j] = ||q_pts[j]||^2 (source pts, indexed by target col j) -- bug-compatible.
    coln = jnp.sum(q_pts * q_pts, axis=-1)                             # (n, Q)
    q_aug = jnp.concatenate([q_pts, jnp.ones((n, Q, 1), jnp.float32)], axis=-1)
    p_aug = jnp.concatenate([-2.0 * pts_km, coln[:, None, :]], axis=1)  # (n, D+1, T)

    # --- tile selection (clamped to the problem size) ---
    tile_q = min(tile_q, Q)
    if Q % tile_q != 0:
        tile_q = Q
    assert Q % tile_q == 0
    assert tile_q % 8 == 0 or tile_q == Q, "query tile must be sublane aligned"
    tile_t = min(tile_t, T)
    if T % tile_t != 0 or tile_t % 128 != 0:
        tile_t = T                     # fall back to a single resident chunk
    n_chunks = T // tile_t

    # --- VMEM budget (resident target block is double-buffered by the pipeline) ---
    def rup(x, m):
        return (x + m - 1) // m * m
    vmem_est = (2 * rup(D_aug, 8) * rup(T, 128)           # resident p_aug
                + 2 * rup(tile_q, 8) * rup(D_aug, 128)    # q_aug tile
                + 2 * 3 * rup(tile_q, 8) * 128            # rown + idx + nnd blocks
                + 3 * rup(tile_q, 8) * rup(tile_t, 128)   # matmul / argmin temps
                ) * 4
    # TODO(synk): for very large target maps (2*40*T*4 B > ~48 MiB, v7x 64 MiB VMEM)
    # chunk the resident target set across an extra grid axis instead.
    vmem_limit = int(min(max(2 * vmem_est, 32 << 20), 100 << 20))

    kernel = functools.partial(_nn_kernel, tile_t=tile_t, n_chunks=n_chunks)
    idx, nnd = pl.pallas_call(
        kernel,
        out_shape=(jax.ShapeDtypeStruct((n, Q, 1), jnp.int32),
                   jax.ShapeDtypeStruct((n, Q, 1), jnp.float32)),
        grid_spec=pltpu.PrefetchScalarGridSpec(
            num_scalar_prefetch=0,
            grid=(n, Q // tile_q),
            in_specs=[
                pl.BlockSpec((1, tile_q, D_aug), lambda b, qi: (b, qi, 0)),  # q_aug
                pl.BlockSpec((1, D_aug, T), lambda b, qi: (b, 0, 0)),        # p_aug resident
                pl.BlockSpec((1, tile_q, 1), lambda b, qi: (b, qi, 0)),      # rown
            ],
            out_specs=[
                pl.BlockSpec((1, tile_q, 1), lambda b, qi: (b, qi, 0)),
                pl.BlockSpec((1, tile_q, 1), lambda b, qi: (b, qi, 0)),
            ],
        ),
        compiler_params=pltpu.CompilerParams(
            dimension_semantics=("parallel", "parallel"),
            vmem_limit_bytes=vmem_limit),
    )(q_aug, p_aug, rown)

    nn = idx[..., 0]                                    # (n, Q)
    nnd_out = nnd[..., 0].reshape(n, 1, sh, sw)         # (n, 1, sh, sw) float32
    idy = (nn // tw).reshape(n, sh, sw)
    idx_x = (nn % tw).reshape(n, sh, sw)
    # torch uses int64 ("int"); int32 is sufficient for these index ranges on TPU.
    nnf = jnp.stack([idy, idx_x], axis=1).astype(jnp.int32)   # (n, 2, sh, sw)
    return nnf, nnd_out


# ----------------------------------------------------------------------------
# Pure-JAX reference (same bugged broadcasting) for a correctness check
# ----------------------------------------------------------------------------
def _reference(source_map, target_map, patch_size=PATCH_SIZE):
    n, c, sh, sw = source_map.shape
    _, _, th, tw = target_map.shape
    q_pts = build_pts_set(source_map, patch_size)
    pts = build_pts_set(target_map, patch_size)
    r_p = jnp.sum(pts * pts, axis=-1)[..., None]        # (n, T, 1)
    r_q = jnp.sum(q_pts * q_pts, axis=-1)[..., None]    # (n, Q, 1)
    mul = jnp.einsum("nqd,ntd->nqt", q_pts, pts)
    dist = r_p - 2.0 * mul + jnp.transpose(r_q, (0, 2, 1))
    nn = jnp.argmin(dist, axis=-1)
    nnd = jnp.min(dist, axis=-1)
    nnf = jnp.stack([(nn // tw).reshape(n, sh, sw),
                     (nn % tw).reshape(n, sh, sw)], axis=1).astype(jnp.int32)
    return nnf, nnd.reshape(n, 1, sh, sw), dist


if __name__ == "__main__":
    key = jax.random.PRNGKey(0)
    k_s, k_t = jax.random.split(key)
    s = jax.random.normal(k_s, (2, 4, 16, 16), dtype=jnp.float32)
    t = jax.random.normal(k_t, (2, 4, 16, 16), dtype=jnp.float32)

    nnf, nnd = patch_match_forward(s, t)
    jax.block_until_ready((nnf, nnd))

    ref_nnf, ref_nnd, ref_dist = _reference(s, t)
    assert nnf.shape == (2, 2, 16, 16) and nnd.shape == (2, 1, 16, 16)
    # min distances must match the reference
    assert bool(jnp.allclose(nnd, ref_nnd, atol=2e-3, rtol=1e-4))
    # index check robust to fp tie-breaking: the reference distance at the
    # kernel-chosen index must attain the reference minimum.
    n_, _, _, tw_ = t.shape
    chosen = (nnf[:, 0] * tw_ + nnf[:, 1]).reshape(n_, -1)            # (n, Q)
    chosen_d = jnp.take_along_axis(ref_dist, chosen[..., None], axis=-1)[..., 0]
    assert bool(jnp.allclose(chosen_d, ref_nnd.reshape(n_, -1), atol=2e-3, rtol=1e-4))
    # non-degenerate data: the vast majority of indices should match exactly
    assert float(jnp.mean((nnf == ref_nnf).astype(jnp.float32))) > 0.99
    print("KERNEL_OK")
</pallas_src>

<mosaic_0001>
module attributes {stable_mosaic.version = 11 : i64} {
  func.func @_nn_kernel(%arg0: i32, %arg1: i32, %arg2: memref<1x256x37xf32, #tpu.memory_space<vmem>>, %arg3: memref<1x37x256xf32, #tpu.memory_space<vmem>>, %arg4: memref<1x256x1xf32, #tpu.memory_space<vmem>>, %arg5: memref<1x256x1xi32, #tpu.memory_space<vmem>>, %arg6: memref<1x256x1xf32, #tpu.memory_space<vmem>>) attributes {dimension_semantics = [#tpu.dimension_semantics<parallel>, #tpu.dimension_semantics<parallel>], iteration_bounds = array<i64: 2, 1>, scalar_prefetch = 0 : i64, scratch_operands = 0 : i64, tpu.core_type = #tpu.core_type<tc>, window_params = [{transform_indices = @transform_0, window_bounds = array<i64: 1, 256, 37>}, {transform_indices = @transform_1, window_bounds = array<i64: 1, 37, 256>}, {transform_indices = @transform_2, window_bounds = array<i64: 1, 256, 1>}, {transform_indices = @transform_3, window_bounds = array<i64: 1, 256, 1>}, {transform_indices = @transform_4, window_bounds = array<i64: 1, 256, 1>}]} {
    %c0 = arith.constant 0 : index
    %c0_0 = arith.constant 0 : index
    %c0_1 = arith.constant 0 : index
    %0 = vector.load %arg2[%c0, %c0_0, %c0_1] : memref<1x256x37xf32, #tpu.memory_space<vmem>>, vector<1x256x37xf32>
    %1 = vector.shape_cast %0 : vector<1x256x37xf32> to vector<256x37xf32>
    %cst = arith.constant 0x7F800000 : f32
    %2 = vector.broadcast %cst : f32 to vector<256x1xf32>
    %c0_i32 = arith.constant 0 : i32
    %3 = vector.broadcast %c0_i32 : i32 to vector<256x1xi32>
    %c0_2 = arith.constant 0 : index
    %c0_3 = arith.constant 0 : index
    %c0_4 = arith.constant 0 : index
    %4 = vector.load %arg3[%c0_2, %c0_3, %c0_4] : memref<1x37x256xf32, #tpu.memory_space<vmem>>, vector<1x37x256xf32>
    %5 = vector.shape_cast %4 : vector<1x37x256xf32> to vector<37x256xf32>
    %cst_5 = arith.constant dense<0.000000e+00> : vector<256x256xf32>
    %6 = tpu.matmul %1, %5, %cst_5 {dimension_numbers = #tpu.dot_dimension_numbers<[1], [0], [0], [1], [0, 0, 1, 1], [], []>} : vector<256x37xf32>, vector<37x256xf32>, vector<256x256xf32> -> vector<256x256xf32>
    %cst_6 = arith.constant dense<0x7F800000> : vector<256xf32>
    %7 = vector.multi_reduction <minimumf>, %6, %cst_6 [1] : vector<256x256xf32> to vector<256xf32>
    %8 = vector.shape_cast %7 : vector<256xf32> to vector<256x1xf32>
    %9 = tpu.iota {dimensions = array<i32: 1>} : vector<1x256xi32>
    %c0_i32_7 = arith.constant 0 : i32
    %10 = vector.broadcast %c0_i32_7 : i32 to vector<1x256xi32>
    %11 = arith.addi %9, %10 : vector<1x256xi32>
    %12 = vector.broadcast %8 : vector<256x1xf32> to vector<256x256xf32>
    %13 = arith.cmpf oeq, %6, %12 : vector<256x256xf32>
    %c2147483647_i32 = arith.constant 2147483647 : i32
    %14 = vector.shape_cast %11 : vector<1x256xi32> to vector<1x256xi32>
    %15 = vector.broadcast %14 : vector<1x256xi32> to vector<256x256xi32>
    %16 = vector.broadcast %c2147483647_i32 : i32 to vector<256x256xi32>
    %17 = arith.select %13, %15, %16 : vector<256x256xi1>, vector<256x256xi32>
    %cst_8 = arith.constant dense<2147483647> : vector<256xi32>
    %18 = vector.multi_reduction <minsi>, %17, %cst_8 [1] : vector<256x256xi32> to vector<256xi32>
    %19 = vector.shape_cast %18 : vector<256xi32> to vector<256x1xi32>
    %20 = arith.cmpf olt, %8, %2 : vector<256x1xf32>
    %21 = arith.select %20, %8, %2 : vector<256x1xi1>, vector<256x1xf32>
    %22 = arith.select %20, %19, %3 : vector<256x1xi1>, vector<256x1xi32>
    %c0_9 = arith.constant 0 : index
    %c0_10 = arith.constant 0 : index
    %c0_11 = arith.constant 0 : index
    %23 = vector.load %arg5[%c0_9, %c0_10, %c0_11] : memref<1x256x1xi32, #tpu.memory_space<vmem>>, vector<1x256x1xi32>
    %24 = vector.shape_cast %23 : vector<1x256x1xi32> to vector<256x1xi32>
    %25 = vector.shape_cast %22 : vector<256x1xi32> to vector<1x256x1xi32>
    tpu.vector_store %arg5[%c0_9, %c0_10, %c0_11], %25 {strides = array<i32>} : memref<1x256x1xi32, #tpu.memory_space<vmem>>, vector<1x256x1xi32>,
    %c0_12 = arith.constant 0 : index
    %c0_13 = arith.constant 0 : index
    %c0_14 = arith.constant 0 : index
    %26 = vector.load %arg4[%c0_12, %c0_13, %c0_14] : memref<1x256x1xf32, #tpu.memory_space<vmem>>, vector<1x256x1xf32>
    %27 = vector.shape_cast %26 : vector<1x256x1xf32> to vector<256x1xf32>
    %28 = arith.addf %21, %27 : vector<256x1xf32>
    %c0_15 = arith.constant 0 : index
    %c0_16 = arith.constant 0 : index
    %c0_17 = arith.constant 0 : index
    %29 = vector.load %arg6[%c0_15, %c0_16, %c0_17] : memref<1x256x1xf32, #tpu.memory_space<vmem>>, vector<1x256x1xf32>
    %30 = vector.shape_cast %29 : vector<1x256x1xf32> to vector<256x1xf32>
    %31 = vector.shape_cast %28 : vector<256x1xf32> to vector<1x256x1xf32>
    tpu.vector_store %arg6[%c0_15, %c0_16, %c0_17], %31 {strides = array<i32>} : memref<1x256x1xf32, #tpu.memory_space<vmem>>, vector<1x256x1xf32>,
    return
  }
  func.func @transform_0(%arg0: i32, %arg1: i32) -> (i32, i32, i32) {
    %c0_i32 = arith.constant 0 : i32
    %c0_i32_0 = arith.constant 0 : i32
    return %arg0, %arg1, %c0_i32 : i32, i32, i32
  }
  func.func @transform_1(%arg0: i32, %arg1: i32) -> (i32, i32, i32) {
    %c0_i32 = arith.constant 0 : i32
    %c0_i32_0 = arith.constant 0 : i32
    %c0_i32_1 = arith.constant 0 : i32
    return %arg0, %c0_i32, %c0_i32_0 : i32, i32, i32
  }
  func.func @transform_2(%arg0: i32, %arg1: i32) -> (i32, i32, i32) {
    %c0_i32 = arith.constant 0 : i32
    %c0_i32_0 = arith.constant 0 : i32
    return %arg0, %arg1, %c0_i32 : i32, i32, i32
  }
  func.func @transform_3(%arg0: i32, %arg1: i32) -> (i32, i32, i32) {
    %c0_i32 = arith.constant 0 : i32
    %c0_i32_0 = arith.constant 0 : i32
    return %arg0, %arg1, %c0_i32 : i32, i32, i32
  }
  func.func @transform_4(%arg0: i32, %arg1: i32) -> (i32, i32, i32) {
    %c0_i32 = arith.constant 0 : i32
    %c0_i32_0 = arith.constant 0 : i32
    return %arg0, %arg1, %c0_i32 : i32, i32, i32
  }
}

</mosaic_0001>

<bundles_post_ra>
// kernel: tpu_custom_call.1
= control target key start
LH: loop header
LB: loop body
LE: loop exit
PB: predicated region body
PF: predicated region fallthrough
CT: control target
= control target key end

     0   :  { %s1991_s15 = smov 0   ;;  %s1993_s16 = smov 0   ;;  %s3332_s0 = inlined_call_operand.vmem [shape: f32[2,256,37], index: 0, kind: input, shape index: {}]   ;;  %s3333_s1 = inlined_call_operand.vmem [shape: f32[2,37,256], index: 1, kind: input, shape index: {}]   ;;  %s3334_s2 = inlined_call_operand.vmem [shape: f32[2,256,1], index: 2, kind: input, shape index: {}]   ;;  %s3335_s3 = inlined_call_operand.vmem [shape: s32[2,256,1], index: 3, kind: output, shape index: {0}]   ;;  %s3336_s4 = inlined_call_operand.vmem [shape: f32[2,256,1], index: 4, kind: output, shape index: {1}]  }
   0x1   :  { %s1995_s17 = smov 0  }
   0x2 LB: > { %s27_s18 = sadd.s32 1, %s1959_s16  ;;  %p1855_p0 = scmp.ge.s32.totalorder %s1963_s17, 1  ;;  %s1963_s17 = sphi %s1995_s17, %s15_s17   ;;  %s1959_s16 = sphi %s1993_s16, %s3570_s16   ;;  %s1955_s15 = sphi %s1991_s15, %s3569_s15  }
   0x3   : > { %p29_p1 = scmp.ge.s32.totalorder %s27_s18, 2  ;;  %p215_p2 = scmp.lt.s32.totalorder %s1963_s17, 3 }
   0x5   : > { %s3572_s18 = smov (%p29_p1, %s27_s18), 0  ;;  %p216_p3 = pnand %p1855_p0, %p215_p2 }
   0x7   : > { %219 = sbr.rel (%p216_p3) target bundleno = 727 (0x2d7), region = 32 }
   0xc   : > { %p273_p4 = scmp.lt.s32.totalorder %s1955_s15, 1  ;;  %v1965_v0 = vmov 0.0   ;;  %vm456_vm0 = vcmask 1044480   ;;  %vm359_vm1 = vcmask 302080   ;;  %vm1555_vm5 = vcmask 7168  }
   0xd   : > { %527 = vmatprep.mubr.f32.mxu0 %v1965_v0  ;;  %623 = vmatprep.mubr.f32.mxu1 %v1965_v0 }
   0xe   : > { %s3574_s15 = smov (!%p273_p4, %s1955_s15), 1 }
   0xf   : > { %s1915_s19 = smul.u32 80, %s3574_s15  ;;  %s2014_s23 = sshll.u32 %s3574_s15, 8 }
  0x10   : > { %s2020_s26 = scalar_lea.vmem %s3332_s0, %s2014_s23  ;;  %s2314_s29 = scalar_lea.vmem %s3334_s2, %s2014_s23 }
  0x11   : > { %s286_s22 = scalar_lea.vmem %s3333_s1, %s1915_s19  ;;  %v317_v11 = vld [vmem:[%s2020_s26] sm:$0xff]  ;;  %v318_v13 = vld [vmem:[%s2020_s26 + $0x8] sm:$0xff]  ;;  %v319_v15 = vld [vmem:[%s2020_s26 + $0x10] sm:$0xff]  ;;  %s2331_s6 = scalar_lea.vmem %s3336_s4, %s2014_s23 }
  0x12   : > { %v358_v1 = vld [vmem:[%s286_s22 + $0x48] sm:$0x1f]  ;;  %v357_v2 = vld [vmem:[%s286_s22 + $0x40] sm:$0x1f]  ;;  %v356_v3 = vld [vmem:[%s286_s22 + $0x38] sm:$0xff]  ;;  %s3163_s9 = scalar_lea.vmem %s3335_s3, %s2014_s23 }
  0x13   : > { %1865 = vmatprep.subr.msk.mxu0 %vm456_vm0, %v358_v1  ;;  %1905 = vmatprep.subr.msk.mxu1 %vm456_vm0, %v358_v1  ;;  %v355_v4 = vld [vmem:[%s286_s22 + $0x30] sm:$0xff]  ;;  %v354_v5 = vld [vmem:[%s286_s22 + $0x28] sm:$0xff]  ;;  %v353_v6 = vld [vmem:[%s286_s22 + $0x20] sm:$0xff] }
  0x14   : > { %1866 = vmatpush1.msk.msra.mxu0 %vm456_vm0, %v357_v2  ;;  %1910 = vmatpush1.msk.msra.mxu1 %vm456_vm0, %v357_v2  ;;  %v352_v7 = vld [vmem:[%s286_s22 + $0x18] sm:$0xff]  ;;  %v351_v8 = vld [vmem:[%s286_s22 + $0x10] sm:$0xff]  ;;  %v350_v9 = vld [vmem:[%s286_s22 + $0x8] sm:$0xff] }
  0x15   : > { %487 = vmatprep.subr.mxu0 %v356_v3  ;;  %1906 = vmatprep.subr.mxu1 %v356_v3  ;;  %v349_v10 = vld [vmem:[%s286_s22] sm:$0xff]  ;;  %v334_v14 = vld [vmem:[%s2020_s26 + $0x88] sm:$0xff]  ;;  %v335_v16 = vld [vmem:[%s2020_s26 + $0x90] sm:$0xff] }
  0x16   : > { %488 = vmatpush1.msra.mxu0 %v355_v4  ;;  %1911 = vmatpush1.msra.mxu1 %v355_v4  ;;  %v333_v12 = vld [vmem:[%s2020_s26 + $0x80] sm:$0xff]  ;;  %v320_v17 = vld [vmem:[%s2020_s26 + $0x18] sm:$0xff]  ;;  %v322_v21 = vld [vmem:[%s2020_s26 + $0x28] sm:$0xff] }
  0x17   : > { %489 = vmatprep.subr.mxu0 %v354_v5  ;;  %1907 = vmatprep.subr.mxu1 %v354_v5  ;;  %v336_v18 = vld [vmem:[%s2020_s26 + $0x98] sm:$0xff]  ;;  %v321_v19 = vld [vmem:[%s2020_s26 + $0x20] sm:$0xff]  ;;  %v338_v22 = vld [vmem:[%s2020_s26 + $0xa8] sm:$0xff] }
  0x18   : > { %490 = vmatpush1.msra.mxu0 %v353_v6  ;;  %1912 = vmatpush1.msra.mxu1 %v353_v6  ;;  %v337_v20 = vld [vmem:[%s2020_s26 + $0xa0] sm:$0xff]  ;;  %v323_v23 = vld [vmem:[%s2020_s26 + $0x30] sm:$0xff]  ;;  %v324_v25 = vld [vmem:[%s2020_s26 + $0x38] sm:$0xff] }
  0x19   : > { %491 = vmatprep.subr.mxu0 %v352_v7  ;;  %1908 = vmatprep.subr.mxu1 %v352_v7  ;;  %v339_v24 = vld [vmem:[%s2020_s26 + $0xb0] sm:$0xff]  ;;  %v340_v26 = vld [vmem:[%s2020_s26 + $0xb8] sm:$0xff]  ;;  %v325_v27 = vld [vmem:[%s2020_s26 + $0x40] sm:$0xff] }
  0x1a   : > { %492 = vmatpush1.msra.mxu0 %v351_v8  ;;  %1913 = vmatpush1.msra.mxu1 %v351_v8  ;;  %v341_v28 = vld [vmem:[%s2020_s26 + $0xc0] sm:$0xff]  ;;  %v326_v29 = vld [vmem:[%s2020_s26 + $0x48] sm:$0xff]  ;;  %v327_v31 = vld [vmem:[%s2020_s26 + $0x50] sm:$0xff] }
  0x1b   : > { %493 = vmatprep.subr.mxu0 %v350_v9  ;;  %1909 = vmatprep.subr.mxu1 %v350_v9  ;;  %v342_v30 = vld [vmem:[%s2020_s26 + $0xc8] sm:$0xff]  ;;  %v343_v32 = vld [vmem:[%s2020_s26 + $0xd0] sm:$0xff]  ;;  %v328_v33 = vld [vmem:[%s2020_s26 + $0x58] sm:$0xff] }
  0x1c   : > { %494 = vmatpush1.msra.mxu0 %v349_v10  ;;  %1914 = vmatpush1.msra.mxu1 %v349_v10  ;;  %v344_v34 = vld [vmem:[%s2020_s26 + $0xd8] sm:$0xff]  ;;  %v329_v35 = vld [vmem:[%s2020_s26 + $0x60] sm:$0xff]  ;;  %v330_v37 = vld [vmem:[%s2020_s26 + $0x68] sm:$0xff] }
  0x1d   : > { %1867 = vmatmul.mubr.msk.f32.vlgmr.msra.gmra.mxu0 %vm359_vm1, %v317_v11  ;;  %1883 = vmatmul.mubr.msk.f32.vlgmr.msra.gmra.mxu1 %vm359_vm1, %v333_v12  ;;  %v345_v36 = vld [vmem:[%s2020_s26 + $0xe0] sm:$0xff]  ;;  %v346_v38 = vld [vmem:[%s2020_s26 + $0xe8] sm:$0xff]  ;;  %v331_v39 = vld [vmem:[%s2020_s26 + $0x70] sm:$0xff] }
  0x1e   : > { %533 = vmatprep.mubr.f32.mxu0 %v1965_v0  ;;  %629 = vmatprep.mubr.f32.mxu1 %v1965_v0  ;;  %v347_v40 = vld [vmem:[%s2020_s26 + $0xf0] sm:$0xff]  ;;  %v332_v41 = vld [vmem:[%s2020_s26 + $0x78] sm:$0xff] }
  0x1f   : > { %v348_v42 = vld [vmem:[%s2020_s26 + $0xf8] sm:$0xff] }
  0x21   : > { %1868 = vmatmul.mubr.msk.f32.gmra.mxu0 %vm359_vm1, %v318_v13  ;;  %1884 = vmatmul.mubr.msk.f32.gmra.mxu1 %vm359_vm1, %v334_v14 }
  0x22   : > { %539 = vmatprep.mubr.f32.mxu0 %v1965_v0  ;;  %635 = vmatprep.mubr.f32.mxu1 %v1965_v0 }
  0x25   : > { %1869 = vmatmul.mubr.msk.f32.gmra.mxu0 %vm359_vm1, %v319_v15  ;;  %1885 = vmatmul.mubr.msk.f32.gmra.mxu1 %vm359_vm1, %v335_v16 }
  0x26   : > { %545 = vmatprep.mubr.f32.mxu0 %v1965_v0  ;;  %641 = vmatprep.mubr.f32.mxu1 %v1965_v0 }
  0x29   : > { %1870 = vmatmul.mubr.msk.f32.gmra.mxu0 %vm359_vm1, %v320_v17  ;;  %1886 = vmatmul.mubr.msk.f32.gmra.mxu1 %vm359_vm1, %v336_v18 }
  0x2a   : > { %551 = vmatprep.mubr.f32.mxu0 %v1965_v0  ;;  %647 = vmatprep.mubr.f32.mxu1 %v1965_v0 }
  0x2d   : > { %1871 = vmatmul.mubr.msk.f32.gmra.mxu0 %vm359_vm1, %v321_v19  ;;  %1887 = vmatmul.mubr.msk.f32.gmra.mxu1 %vm359_vm1, %v337_v20 }
  0x2e   : > { %557 = vmatprep.mubr.f32.mxu0 %v1965_v0  ;;  %653 = vmatprep.mubr.f32.mxu1 %v1965_v0 }
  0x31   : > { %1872 = vmatmul.mubr.msk.f32.gmra.mxu0 %vm359_vm1, %v322_v21  ;;  %1888 = vmatmul.mubr.msk.f32.gmra.mxu1 %vm359_vm1, %v338_v22 }
  0x32   : > { %563 = vmatprep.mubr.f32.mxu0 %v1965_v0  ;;  %659 = vmatprep.mubr.f32.mxu1 %v1965_v0 }
  0x35   : > { %1873 = vmatmul.mubr.msk.f32.gmra.mxu0 %vm359_vm1, %v323_v23  ;;  %1889 = vmatmul.mubr.msk.f32.gmra.mxu1 %vm359_vm1, %v339_v24 }
  0x36   : > { %569 = vmatprep.mubr.f32.mxu0 %v1965_v0  ;;  %665 = vmatprep.mubr.f32.mxu1 %v1965_v0 }
  0x39   : > { %1874 = vmatmul.mubr.msk.f32.gmra.mxu0 %vm359_vm1, %v324_v25  ;;  %1890 = vmatmul.mubr.msk.f32.gmra.mxu1 %vm359_vm1, %v340_v26 }
  0x3a   : > { %575 = vmatprep.mubr.f32.mxu0 %v1965_v0  ;;  %671 = vmatprep.mubr.f32.mxu1 %v1965_v0 }
  0x3d   : > { %1875 = vmatmul.mubr.msk.f32.gmra.mxu0 %vm359_vm1, %v325_v27  ;;  %1891 = vmatmul.mubr.msk.f32.gmra.mxu1 %vm359_vm1, %v341_v28 }
  0x3e   : > { %581 = vmatprep.mubr.f32.mxu0 %v1965_v0  ;;  %677 = vmatprep.mubr.f32.mxu1 %v1965_v0 }
  0x41   : > { %1876 = vmatmul.mubr.msk.f32.gmra.mxu0 %vm359_vm1, %v326_v29  ;;  %1892 = vmatmul.mubr.msk.f32.gmra.mxu1 %vm359_vm1, %v342_v30 }
  0x42   : > { %587 = vmatprep.mubr.f32.mxu0 %v1965_v0  ;;  %683 = vmatprep.mubr.f32.mxu1 %v1965_v0 }
  0x45   : > { %1877 = vmatmul.mubr.msk.f32.gmra.mxu0 %vm359_vm1, %v327_v31  ;;  %1893 = vmatmul.mubr.msk.f32.gmra.mxu1 %vm359_vm1, %v343_v32 }
  0x46   : > { %593 = vmatprep.mubr.f32.mxu0 %v1965_v0  ;;  %689 = vmatprep.mubr.f32.mxu1 %v1965_v0 }
  0x49   : > { %1878 = vmatmul.mubr.msk.f32.gmra.mxu0 %vm359_vm1, %v328_v33  ;;  %1894 = vmatmul.mubr.msk.f32.gmra.mxu1 %vm359_vm1, %v344_v34 }
  0x4a   : > { %599 = vmatprep.mubr.f32.mxu0 %v1965_v0  ;;  %695 = vmatprep.mubr.f32.mxu1 %v1965_v0 }
  0x4d   : > { %1879 = vmatmul.mubr.msk.f32.gmra.mxu0 %vm359_vm1, %v329_v35  ;;  %1895 = vmatmul.mubr.msk.f32.gmra.mxu1 %vm359_vm1, %v345_v36 }
  0x4e   : > { %605 = vmatprep.mubr.f32.mxu0 %v1965_v0  ;;  %701 = vmatprep.mubr.f32.mxu1 %v1965_v0 }
  0x51   : > { %1880 = vmatmul.mubr.msk.f32.gmra.mxu0 %vm359_vm1, %v330_v37  ;;  %1896 = vmatmul.mubr.msk.f32.gmra.mxu1 %vm359_vm1, %v346_v38 }
  0x52   : > { %611 = vmatprep.mubr.f32.mxu0 %v1965_v0  ;;  %707 = vmatprep.mubr.f32.mxu1 %v1965_v0 }
  0x55   : > { %1881 = vmatmul.mubr.msk.f32.gmra.mxu0 %vm359_vm1, %v331_v39  ;;  %1897 = vmatmul.mubr.msk.f32.gmra.mxu1 %vm359_vm1, %v347_v40 }
  0x56   : > { %617 = vmatprep.mubr.f32.mxu0 %v1965_v0  ;;  %713 = vmatprep.mubr.f32.mxu1 %v1965_v0 }
  0x59   : > { %1882 = vmatmul.mubr.msk.f32.gmra.mxu0 %vm359_vm1, %v332_v41  ;;  %1898 = vmatmul.mubr.msk.f32.gmra.mxu1 %vm359_vm1, %v348_v42 }
  0xdd   : > { %v2116_v43 = vpop.f32.mrf.mxu0  ;;  %v2118_v44 = vpop.f32.mrf.mxu1 }
  0xdf   : > { %v2120_v45 = vpop.f32.mrf.mxu0  ;;  %v2122_v46 = vpop.f32.mrf.mxu1 }
  0xe0   : > { %v720_v47 = vmin.f32 %v2116_v43, %v2120_v45  ;;  %v768_v53 = vmin.f32 %v2118_v44, %v2122_v46 }
  0xe1   : > { %v2126_v48 = vpop.f32.mrf.mxu0  ;;  %v2128_v49 = vpop.f32.mrf.mxu1 }
  0xe2   : > { %721 = vmin.xlane.f32.xlu0 %v720_v47 }
  0xe3   : > { %v2130_v50 = vpop.f32.mrf.mxu0  ;;  %v2132_v51 = vpop.f32.mrf.mxu1 }
  0xe4   : > { %v771_v52 = vmin.f32 %v2128_v49, %v2132_v51  ;;  %v723_v58 = vmin.f32 %v2126_v48, %v2130_v50 }
  0xe5   : > { %v2138_v54 = vpop.f32.mrf.mxu0  ;;  %v2140_v55 = vpop.f32.mrf.mxu1 }
  0xe6   : > { %772 = vmin.xlane.f32.xlu1 %v771_v52  ;;  %769 = vmin.xlane.f32.xlu0 %v768_v53 }
  0xe7   : > { %v2142_v56 = vpop.f32.mrf.mxu0  ;;  %v2144_v57 = vpop.f32.mrf.mxu1 }
  0xe8   : > { %v726_v59 = vmin.f32 %v2138_v54, %v2142_v56  ;;  %v774_v62 = vmin.f32 %v2140_v55, %v2144_v57 }
  0xe9   : > { %v2150_v60 = vpop.f32.mrf.mxu0  ;;  %v2152_v61 = vpop.f32.mrf.mxu1 }
  0xea   : > { %724 = vmin.xlane.f32.xlu0 %v723_v58  ;;  %727 = vmin.xlane.f32.xlu1 %v726_v59 }
  0xeb   : > { %v2156_v63 = vpop.f32.mrf.mxu0  ;;  %v2158_v0 = vpop.f32.mrf.mxu1 }
  0xec   : > { %v729_v1 = vmin.f32 %v2150_v60, %v2156_v63  ;;  %v777_v4 = vmin.f32 %v2152_v61, %v2158_v0 }
  0xed   : > { %v2162_v2 = vpop.f32.mrf.mxu0  ;;  %v2164_v3 = vpop.f32.mrf.mxu1 }
  0xee   : > { %775 = vmin.xlane.f32.xlu0 %v774_v62  ;;  %730 = vmin.xlane.f32.xlu1 %v729_v1 }
  0xef   : > { %v2168_v5 = vpop.f32.mrf.mxu0  ;;  %v2170_v6 = vpop.f32.mrf.mxu1 }
  0xf0   : > { %v732_v7 = vmin.f32 %v2162_v2, %v2168_v5  ;;  %v780_v10 = vmin.f32 %v2164_v3, %v2170_v6 }
  0xf1   : > { %v2174_v8 = vpop.f32.mrf.mxu0  ;;  %v2176_v9 = vpop.f32.mrf.mxu1 }
  0xf2   : > { %778 = vmin.xlane.f32.xlu1 %v777_v4  ;;  %733 = vmin.xlane.f32.xlu0 %v732_v7 }
  0xf3   : > { %v2180_v11 = vpop.f32.mrf.mxu0  ;;  %v2182_v12 = vpop.f32.mrf.mxu1 }
  0xf4   : > { %v735_v13 = vmin.f32 %v2174_v8, %v2180_v11  ;;  %v783_v16 = vmin.f32 %v2176_v9, %v2182_v12 }
  0xf5   : > { %v2186_v14 = vpop.f32.mrf.mxu0  ;;  %v2188_v15 = vpop.f32.mrf.mxu1 }
  0xf6   : > { %781 = vmin.xlane.f32.xlu0 %v780_v10  ;;  %736 = vmin.xlane.f32.xlu1 %v735_v13 }
  0xf7   : > { %v2192_v17 = vpop.f32.mrf.mxu0  ;;  %v2194_v18 = vpop.f32.mrf.mxu1 }
  0xf8   : > { %v738_v19 = vmin.f32 %v2186_v14, %v2192_v17  ;;  %v786_v22 = vmin.f32 %v2188_v15, %v2194_v18 }
  0xf9   : > { %v2198_v20 = vpop.f32.mrf.mxu0  ;;  %v2200_v21 = vpop.f32.mrf.mxu1 }
  0xfa   : > { %784 = vmin.xlane.f32.xlu1 %v783_v16  ;;  %739 = vmin.xlane.f32.xlu0 %v738_v19 }
  0xfb   : > { %v2204_v23 = vpop.f32.mrf.mxu0  ;;  %v2206_v24 = vpop.f32.mrf.mxu1 }
  0xfc   : > { %v741_v25 = vmin.f32 %v2198_v20, %v2204_v23  ;;  %v789_v28 = vmin.f32 %v2200_v21, %v2206_v24 }
  0xfd   : > { %v2210_v26 = vpop.f32.mrf.mxu0  ;;  %v2212_v27 = vpop.f32.mrf.mxu1 }
  0xfe   : > { %787 = vmin.xlane.f32.xlu0 %v786_v22  ;;  %742 = vmin.xlane.f32.xlu1 %v741_v25 }
  0xff   : > { %v2216_v29 = vpop.f32.mrf.mxu0  ;;  %v2218_v30 = vpop.f32.mrf.mxu1 }
 0x100   : > { %v744_v31 = vmin.f32 %v2210_v26, %v2216_v29  ;;  %v792_v34 = vmin.f32 %v2212_v27, %v2218_v30 }
 0x101   : > { %v2222_v32 = vpop.f32.mrf.mxu0  ;;  %v2224_v33 = vpop.f32.mrf.mxu1 }
 0x102   : > { %790 = vmin.xlane.f32.xlu1 %v789_v28  ;;  %745 = vmin.xlane.f32.xlu0 %v744_v31 }
 0x103   : > { %v2228_v35 = vpop.f32.mrf.mxu0  ;;  %v2230_v36 = vpop.f32.mrf.mxu1 }
 0x104   : > { %v747_v37 = vmin.f32 %v2222_v32, %v2228_v35  ;;  %v795_v40 = vmin.f32 %v2224_v33, %v2230_v36 }
 0x105   : > { %v2234_v38 = vpop.f32.mrf.mxu0  ;;  %v2236_v39 = vpop.f32.mrf.mxu1 }
 0x106   : > { %793 = vmin.xlane.f32.xlu0 %v792_v34  ;;  %748 = vmin.xlane.f32.xlu1 %v747_v37 }
 0x107   : > { %v2240_v41 = vpop.f32.mrf.mxu0  ;;  %v2242_v42 = vpop.f32.mrf.mxu1 }
 0x108   : > { %v750_v47 = vmin.f32 %v2234_v38, %v2240_v41  ;;  %v798_v58 = vmin.f32 %v2236_v39, %v2242_v42 }
 0x109   : > { %v2246_v52 = vpop.f32.mrf.mxu0  ;;  %v2248_v53 = vpop.f32.mrf.mxu1 }
 0x10a   : > { %796 = vmin.xlane.f32.xlu1 %v795_v40  ;;  %751 = vmin.xlane.f32.xlu0 %v750_v47 }
 0x10b   : > { %v2252_v59 = vpop.f32.mrf.mxu0  ;;  %v2254_v62 = vpop.f32.mrf.mxu1 }
 0x10c   : > { %v753_v1 = vmin.f32 %v2246_v52, %v2252_v59  ;;  %v801_v10 = vmin.f32 %v2248_v53, %v2254_v62 }
 0x10d   : > { %v2258_v4 = vpop.f32.mrf.mxu0  ;;  %v2260_v7 = vpop.f32.mrf.mxu1 }
 0x10e   : > { %799 = vmin.xlane.f32.xlu0 %v798_v58  ;;  %754 = vmin.xlane.f32.xlu1 %v753_v1 }
 0x10f   : > { %v2264_v13 = vpop.f32.mrf.mxu0  ;;  %v2266_v16 = vpop.f32.mrf.mxu1 }
 0x110   : > { %3421 = vst [vmem:[#allocation2_spill] sm:$0xff] %v2266_v16  ;;  %v756_v19 = vmin.f32 %v2258_v4, %v2264_v13  ;;  %v804_v28 = vmin.f32 %v2260_v7, %v2266_v16 }
 0x111   : > { %v2270_v22 = vpop.f32.mrf.mxu0  ;;  %v2272_v25 = vpop.f32.mrf.mxu1 }
 0x112   : > { %3422 = vst [vmem:[#allocation3_spill] sm:$0xff] %v2272_v25  ;;  %802 = vmin.xlane.f32.xlu1 %v801_v10  ;;  %757 = vmin.xlane.f32.xlu0 %v756_v19 }
 0x113   : > { %v2276_v31 = vpop.f32.mrf.mxu0  ;;  %v2278_v34 = vpop.f32.mrf.mxu1 }
 0x114   : > { %3423 = vst [vmem:[#allocation4_spill] sm:$0xff] %v2276_v31  ;;  %3424 = vst [vmem:[#allocation5_spill] sm:$0xff] %v2278_v34  ;;  %v759_v37 = vmin.f32 %v2270_v22, %v2276_v31  ;;  %v807_v58 = vmin.f32 %v2272_v25, %v2278_v34 }
 0x115   : > { %v2282_v40 = vpop.f32.mrf.mxu0  ;;  %v2284_v47 = vpop.f32.mrf.mxu1 }
 0x116   : > { %3425 = vst [vmem:[#allocation6_spill] sm:$0xff] %v2282_v40  ;;  %805 = vmin.xlane.f32.xlu0 %v804_v28  ;;  %760 = vmin.xlane.f32.xlu1 %v759_v37 }
 0x117   : > { %v2288_v1 = vpop.f32.mrf.mxu0  ;;  %v2290_v10 = vpop.f32.mrf.mxu1 }
 0x118   : > { %3426 = vst [vmem:[#allocation7_spill] sm:$0xff] %v2288_v1  ;;  %3427 = vst [vmem:[#allocation8_spill] sm:$0xff] %v2290_v10  ;;  %v762_v19 = vmin.f32 %v2282_v40, %v2288_v1  ;;  %v810_v28 = vmin.f32 %v2284_v47, %v2290_v10  ;;  %v816_v40 = vlaneseq }
 0x119   : > { %v2294_v16 = vpop.f32.mrf.mxu0  ;;  %v2296_v31 = vpop.f32.mrf.mxu1 }
 0x11a   : > { %3428 = vst [vmem:[#allocation9_spill] sm:$0xff] %v2296_v31  ;;  %808 = vmin.xlane.f32.xlu1 %v807_v58  ;;  %763 = vmin.xlane.f32.xlu0 %v762_v19  ;;  %v2308_v58 = vand.u32 127, %v816_v40 }
 0x11b   : > { %v2300_v37 = vpop.f32.mrf.mxu0  ;;  %v2302_v34 = vpop.f32.mrf.mxu1 }
 0x11c   : > { %3429 = vst [vmem:[#allocation10_spill] sm:$0xff] %v2302_v34  ;;  %v765_v25 = vmin.f32 %v2294_v16, %v2300_v37  ;;  %v813_v1 = vmin.f32 %v2296_v31, %v2302_v34  ;;  %v2317_v19 = vadd.s32 128, %v2308_v58 }
 0x11e   : > { %811 = vmin.xlane.f32.xlu0 %v810_v28  ;;  %766 = vmin.xlane.f32.xlu1 %v765_v25  ;;  %v1588_v28 = vld [vmem:[%s2314_s29] sm:$0xff] }
 0x122   : > { %814 = vmin.xlane.f32.xlu1 %v813_v1 }
 0x16b   : > { %v2319_v10 = vpop.xlane.xlu0 %721 }
 0x16c   : > { %3430 = vst [vmem:[#allocation11_spill] sm:$0xff] %v2319_v10  ;;  %vm819_vm2 = vcmp.eq.f32.partialorder %v2116_v43, %v2319_v10  ;;  %vm820_vm3 = vcmp.eq.f32.partialorder %v2120_v45, %v2319_v10  ;;  %vm1459_vm4 = vcmp.lt.f32.partialorder %v2319_v10, inf }
 0x16d   : > { %v883_v25 = vsel %vm819_vm2, %v2308_v58, 2147483647  ;;  %v884_v40 = vsel %vm820_vm3, %v2317_v19, 2147483647  ;;  %v1491_v1 = vsel %vm1459_vm4, %v2319_v10, inf }
 0x16e   : > { %vm947_vm6 = vcmp.lt.s32.totalorder %v883_v25, %v884_v40  ;;  %v1620_v43 = vadd.f32 %v1588_v28, %v1491_v1 }
 0x16f   : > { %v2338_v45 = vpop.xlane.xlu1 %772  ;;  %v2340_v34 = vpop.xlane.xlu0 %769  ;;  %v2342_v31 = vsel %vm947_vm6, %v883_v25, %v884_v40 }
 0x170   : > { %3431 = vst [vmem:[#allocation12_spill] sm:$0xff] %v2338_v45  ;;  %3432 = vst [vmem:[#allocation13_spill] sm:$0xff] %v2340_v34  ;;  %vm853_vm7 = vcmp.eq.f32.partialorder %v2128_v49, %v2338_v45  ;;  %vm854_vm8 = vcmp.eq.f32.partialorder %v2132_v51, %v2338_v45  ;;  %vm851_vm9 = vcmp.eq.f32.partialorder %v2118_v44, %v2340_v34  ;;  %v950_v28 = vshra.s32 %v2342_v31, 16 }
 0x171   : > { %3433 = vst [vmem:[#allocation14_spill] sm:$0xff] %v2342_v31  ;;  %vm852_vm10 = vcmp.eq.f32.partialorder %v2122_v46, %v2340_v34  ;;  %1652 = vst.msk [vmem:[%s2331_s6] sm:$0xff] %vm1555_vm5, %v1620_v43  ;;  %v915_v1 = vsel %vm851_vm9, %v2308_v58, 2147483647  ;;  %v917_v49 = vsel %vm853_vm7, %v2308_v58, 2147483647 }
 0x172   : > { %v916_v25 = vsel %vm852_vm10, %v2317_v19, 2147483647  ;;  %v918_v40 = vsel %vm854_vm8, %v2317_v19, 2147483647  ;;  %v2363_v44 = vcvt.s32.f32 %v950_v28 }
 0x173   : > { %vm1203_vm11 = vcmp.lt.s32.totalorder %v915_v1, %v916_v25  ;;  %v2359_v51 = vpop.xlane.xlu0 %724  ;;  %v2361_v10 = vpop.xlane.xlu1 %727  ;;  %vm1219_vm12 = vcmp.lt.s32.totalorder %v917_v49, %v918_v40 }
 0x174   : > { %3434 = vst [vmem:[#allocation15_spill] sm:$0xff] %v2359_v51  ;;  %3435 = vst [vmem:[#allocation16_spill] sm:$0xff] %v2361_v10  ;;  %v2365_v46 = vsel %vm1203_vm11, %v915_v1, %v916_v25  ;;  %vm821_vm13 = vcmp.eq.f32.partialorder %v2126_v48, %v2359_v51  ;;  %vm822_vm14 = vcmp.eq.f32.partialorder %v2130_v50, %v2359_v51  ;;  %953 = vmin.xlane.f32.xlu0 %v2363_v44 }
 0x175   : > { %3436 = vst [vmem:[#allocation17_spill] sm:$0xff] %v2363_v44  ;;  %3437 = vst [vmem:[#allocation18_spill] sm:$0xff] %v2365_v46  ;;  %vm823_vm15 = vcmp.eq.f32.partialorder %v2138_v54, %v2361_v10  ;;  %vm824_vm0 = vcmp.eq.f32.partialorder %v2142_v56, %v2361_v10  ;;  %v1206_v43 = vshra.s32 %v2365_v46, 16  ;;  %v2379_v25 = vsel %vm1219_vm12, %v917_v49, %v918_v40 }
 0x176   : > { %v887_v28 = vsel %vm823_vm15, %v2308_v58, 2147483647  ;;  %v888_v1 = vsel %vm824_vm0, %v2317_v19, 2147483647  ;;  %3438 = vst [vmem:[#allocation19_spill] sm:$0xff] %v2379_v25  ;;  %v1222_v54 = vshra.s32 %v2379_v25, 16 }
 0x177   : > { %vm979_vm1 = vcmp.lt.s32.totalorder %v887_v28, %v888_v1  ;;  %v885_v48 = vsel %vm821_vm13, %v2308_v58, 2147483647  ;;  %v886_v50 = vsel %vm822_vm14, %v2317_v19, 2147483647  ;;  %v2384_v31 = vpop.xlane.xlu0 %775  ;;  %v2386_v56 = vpop.xlane.xlu1 %730  ;;  %v2388_v44 = vcvt.s32.f32 %v1206_v43 }
 0x178   : > { %3439 = vst [vmem:[#allocation20_spill] sm:$0xff] %v2384_v31  ;;  %v2390_v46 = vsel %vm979_vm1, %v887_v28, %v888_v1  ;;  %vm963_vm2 = vcmp.lt.s32.totalorder %v885_v48, %v886_v50  ;;  %vm855_vm3 = vcmp.eq.f32.partialorder %v2140_v55, %v2384_v31  ;;  %vm856_vm6 = vcmp.eq.f32.partialorder %v2144_v57, %v2384_v31 }
 0x179   : > { %vm825_vm7 = vcmp.eq.f32.partialorder %v2150_v60, %v2386_v56  ;;  %vm826_vm8 = vcmp.eq.f32.partialorder %v2156_v63, %v2386_v56  ;;  %1209 = vmin.xlane.f32.xlu0 %v2388_v44  ;;  %v982_v49 = vshra.s32 %v2390_v46, 16  ;;  %v2402_v40 = vsel %vm963_vm2, %v885_v48, %v886_v50 }
 0x17a   : > { %v919_v43 = vsel %vm855_vm3, %v2308_v58, 2147483647  ;;  %v920_v28 = vsel %vm856_vm6, %v2317_v19, 2147483647  ;;  %v966_v55 = vshra.s32 %v2402_v40, 16  ;;  %v2407_v57 = vcvt.s32.f32 %v1222_v54 }
 0x17b   : > { %vm1235_vm9 = vcmp.lt.s32.totalorder %v919_v43, %v920_v28  ;;  %v2409_v1 = vpop.xlane.xlu1 %778  ;;  %v2411_v60 = vpop.xlane.xlu0 %733  ;;  %v2413_v63 = vcvt.s32.f32 %v982_v49  ;;  %v889_v48 = vsel %vm825_vm7, %v2308_v58, 2147483647  ;;  %v890_v50 = vsel %vm826_vm8, %v2317_v19, 2147483647 }
 0x17c   : > { %v2415_v25 = vsel %vm1235_vm9, %v919_v43, %v920_v28  ;;  %vm857_vm10 = vcmp.eq.f32.partialorder %v2152_v61, %v2409_v1  ;;  %vm858_vm11 = vcmp.eq.f32.partialorder %v2158_v0, %v2409_v1  ;;  %vm827_vm12 = vcmp.eq.f32.partialorder %v2162_v2, %v2411_v60 }
 0x17d   : > { %3440 = vst [vmem:[#allocation21_spill] sm:$0xff] %v2413_v63  ;;  %3441 = vst [vmem:[#allocation22_spill] sm:$0xff] %v2415_v25  ;;  %vm828_vm13 = vcmp.eq.f32.partialorder %v2168_v5, %v2411_v60  ;;  %985 = vmin.xlane.f32.xlu0 %v2413_v63  ;;  %v2428_v54 = vcvt.s32.f32 %v966_v55  ;;  %v1238_v49 = vshra.s32 %v2415_v25, 16  ;;  %v891_v43 = vsel %vm827_vm12, %v2308_v58, 2147483647 }
 0x17e   : > { %v892_v28 = vsel %vm828_vm13, %v2317_v19, 2147483647  ;;  %vm995_vm15 = vcmp.lt.s32.totalorder %v889_v48, %v890_v50  ;;  %v921_v61 = vsel %vm857_vm10, %v2308_v58, 2147483647  ;;  %v922_v0 = vsel %vm858_vm11, %v2317_v19, 2147483647 }
 0x17f   : > { %3442 = vst [vmem:[#allocation23_spill] sm:$0xff] %v2428_v54  ;;  %vm1011_vm14 = vcmp.lt.s32.totalorder %v891_v43, %v892_v28  ;;  %969 = vmin.xlane.f32.xlu1 %v2428_v54  ;;  %v2436_v2 = vpop.xlane.xlu0 %781  ;;  %v2438_v5 = vpop.xlane.xlu1 %736  ;;  %v2440_v55 = vcvt.s32.f32 %v1238_v49  ;;  %v2444_v25 = vsel %vm995_vm15, %v889_v48, %v890_v50  ;;  %vm1251_vm0 = vcmp.lt.s32.totalorder %v921_v61, %v922_v0 }
 0x180   : > { %v2442_v63 = vsel %vm1011_vm14, %v891_v43, %v892_v28  ;;  %3445 = vst [vmem:[#allocation26_spill] sm:$0xff] %v2444_v25  ;;  %vm859_vm1 = vcmp.eq.f32.partialorder %v2164_v3, %v2436_v2  ;;  %vm860_vm2 = vcmp.eq.f32.partialorder %v2170_v6, %v2436_v2  ;;  %vm829_vm3 = vcmp.eq.f32.partialorder %v2174_v8, %v2438_v5 }
 0x181   : > { %3443 = vst [vmem:[#allocation24_spill] sm:$0xff] %v2440_v55  ;;  %3444 = vst [vmem:[#allocation25_spill] sm:$0xff] %v2442_v63  ;;  %vm830_vm6 = vcmp.eq.f32.partialorder %v2180_v11, %v2438_v5  ;;  %1241 = vmin.xlane.f32.xlu0 %v2440_v55  ;;  %v1014_v49 = vshra.s32 %v2442_v63, 16  ;;  %v998_v48 = vshra.s32 %v2444_v25, 16  ;;  %v923_v50 = vsel %vm859_vm1, %v2308_v58, 2147483647 }
 0x182   : > { %v924_v43 = vsel %vm860_vm2, %v2317_v19, 2147483647  ;;  %v2459_v3 = vsel %vm1251_vm0, %v921_v61, %v922_v0  ;;  %v893_v6 = vsel %vm829_vm3, %v2308_v58, 2147483647  ;;  %v894_v8 = vsel %vm830_vm6, %v2317_v19, 2147483647 }
 0x183   : > { %vm1267_vm7 = vcmp.lt.s32.totalorder %v923_v50, %v924_v43  ;;  %1225 = vmin.xlane.f32.xlu1 %v2407_v57  ;;  %v2464_v11 = vpop.xlane.xlu1 %784  ;;  %v2466_v28 = vpop.xlane.xlu0 %739  ;;  %v2468_v55 = vcvt.s32.f32 %v1014_v49  ;;  %v2470_v25 = vcvt.s32.f32 %v998_v48  ;;  %v1254_v54 = vshra.s32 %v2459_v3, 16 }
 0x184   : > { %v2472_v63 = vsel %vm1267_vm7, %v923_v50, %v924_v43  ;;  %vm861_vm8 = vcmp.eq.f32.partialorder %v2176_v9, %v2464_v11  ;;  %vm862_vm9 = vcmp.eq.f32.partialorder %v2182_v12, %v2464_v11  ;;  %vm831_vm10 = vcmp.eq.f32.partialorder %v2186_v14, %v2466_v28 }
 0x185   : > { %3446 = vst [vmem:[#allocation27_spill] sm:$0xff] %v2470_v25  ;;  %vm832_vm11 = vcmp.eq.f32.partialorder %v2192_v17, %v2466_v28  ;;  %1017 = vmin.xlane.f32.xlu0 %v2468_v55  ;;  %v1270_v61 = vshra.s32 %v2472_v63, 16  ;;  %v2485_v0 = vcvt.s32.f32 %v1254_v54  ;;  %v895_v49 = vsel %vm831_vm10, %v2308_v58, 2147483647 }
 0x186   : > { %v896_v48 = vsel %vm832_vm11, %v2317_v19, 2147483647  ;;  %vm1027_vm13 = vcmp.lt.s32.totalorder %v893_v6, %v894_v8  ;;  %v925_v9 = vsel %vm861_vm8, %v2308_v58, 2147483647  ;;  %v926_v12 = vsel %vm862_vm9, %v2317_v19, 2147483647 }
 0x187   : > { %vm1043_vm12 = vcmp.lt.s32.totalorder %v895_v49, %v896_v48  ;;  %1001 = vmin.xlane.f32.xlu1 %v2470_v25  ;;  %v2492_v14 = vpop.xlane.xlu0 %787  ;;  %v2494_v17 = vpop.xlane.xlu1 %742  ;;  %v2496_v50 = vcvt.s32.f32 %v1270_v61  ;;  %v2500_v43 = vsel %vm1027_vm13, %v893_v6, %v894_v8  ;;  %vm1283_vm14 = vcmp.lt.s32.totalorder %v925_v9, %v926_v12 }
 0x188   : > { %v2498_v54 = vsel %vm1043_vm12, %v895_v49, %v896_v48  ;;  %3449 = vst [vmem:[#allocation30_spill] sm:$0xff] %v2500_v43  ;;  %vm863_vm15 = vcmp.eq.f32.partialorder %v2188_v15, %v2492_v14  ;;  %vm864_vm0 = vcmp.eq.f32.partialorder %v2194_v18, %v2492_v14  ;;  %vm833_vm1 = vcmp.eq.f32.partialorder %v2198_v20, %v2494_v17 }
 0x189   : > { %3447 = vst [vmem:[#allocation28_spill] sm:$0xff] %v2496_v50  ;;  %3448 = vst [vmem:[#allocation29_spill] sm:$0xff] %v2498_v54  ;;  %vm834_vm2 = vcmp.eq.f32.partialorder %v2204_v23, %v2494_v17  ;;  %1273 = vmin.xlane.f32.xlu0 %v2496_v50  ;;  %v1046_v61 = vshra.s32 %v2498_v54, 16  ;;  %v1030_v6 = vshra.s32 %v2500_v43, 16  ;;  %v927_v8 = vsel %vm863_vm15, %v2308_v58, 2147483647 }
 0x18a   : > { %v928_v49 = vsel %vm864_vm0, %v2317_v19, 2147483647  ;;  %v2515_v15 = vsel %vm1283_vm14, %v925_v9, %v926_v12  ;;  %v897_v18 = vsel %vm833_vm1, %v2308_v58, 2147483647  ;;  %v898_v20 = vsel %vm834_vm2, %v2317_v19, 2147483647 }
 0x18b   : > { %vm1299_vm3 = vcmp.lt.s32.totalorder %v927_v8, %v928_v49  ;;  %1257 = vmin.xlane.f32.xlu1 %v2485_v0  ;;  %v2520_v23 = vpop.xlane.xlu1 %790  ;;  %v2522_v48 = vpop.xlane.xlu0 %745  ;;  %v2524_v50 = vcvt.s32.f32 %v1046_v61  ;;  %v2526_v43 = vcvt.s32.f32 %v1030_v6  ;;  %v1286_v25 = vshra.s32 %v2515_v15, 16 }
 0x18c   : > { %v2528_v54 = vsel %vm1299_vm3, %v927_v8, %v928_v49  ;;  %vm865_vm6 = vcmp.eq.f32.partialorder %v2200_v21, %v2520_v23  ;;  %vm866_vm7 = vcmp.eq.f32.partialorder %v2206_v24, %v2520_v23  ;;  %vm835_vm8 = vcmp.eq.f32.partialorder %v2210_v26, %v2522_v48 }
 0x18d   : > { %3450 = vst [vmem:[#allocation31_spill] sm:$0xff] %v2526_v43  ;;  %vm836_vm9 = vcmp.eq.f32.partialorder %v2216_v29, %v2522_v48  ;;  %1049 = vmin.xlane.f32.xlu0 %v2524_v50  ;;  %v1302_v9 = vshra.s32 %v2528_v54, 16  ;;  %v2541_v12 = vcvt.s32.f32 %v1286_v25  ;;  %v899_v61 = vsel %vm835_vm8, %v2308_v58, 2147483647 }
 0x18e   : > { %v900_v6 = vsel %vm836_vm9, %v2317_v19, 2147483647  ;;  %vm1059_vm11 = vcmp.lt.s32.totalorder %v897_v18, %v898_v20  ;;  %v929_v21 = vsel %vm865_vm6, %v2308_v58, 2147483647  ;;  %v930_v24 = vsel %vm866_vm7, %v2317_v19, 2147483647 }
 0x18f   : > { %vm1075_vm10 = vcmp.lt.s32.totalorder %v899_v61, %v900_v6  ;;  %1033 = vmin.xlane.f32.xlu1 %v2526_v43  ;;  %v2548_v26 = vpop.xlane.xlu0 %793  ;;  %v2550_v29 = vpop.xlane.xlu1 %748  ;;  %v2552_v8 = vcvt.s32.f32 %v1302_v9  ;;  %v2556_v49 = vsel %vm1059_vm11, %v897_v18, %v898_v20  ;;  %vm1315_vm12 = vcmp.lt.s32.totalorder %v929_v21, %v930_v24 }
 0x190   : > { %v2554_v25 = vsel %vm1075_vm10, %v899_v61, %v900_v6  ;;  %3453 = vst [vmem:[#allocation34_spill] sm:$0xff] %v2556_v49  ;;  %vm867_vm13 = vcmp.eq.f32.partialorder %v2212_v27, %v2548_v26  ;;  %vm868_vm14 = vcmp.eq.f32.partialorder %v2218_v30, %v2548_v26  ;;  %vm837_vm15 = vcmp.eq.f32.partialorder %v2222_v32, %v2550_v29 }
 0x191   : > { %3451 = vst [vmem:[#allocation32_spill] sm:$0xff] %v2552_v8  ;;  %3452 = vst [vmem:[#allocation33_spill] sm:$0xff] %v2554_v25  ;;  %vm838_vm0 = vcmp.eq.f32.partialorder %v2228_v35, %v2550_v29  ;;  %1305 = vmin.xlane.f32.xlu0 %v2552_v8  ;;  %v1078_v9 = vshra.s32 %v2554_v25, 16  ;;  %v1062_v18 = vshra.s32 %v2556_v49, 16  ;;  %v931_v20 = vsel %vm867_vm13, %v2308_v58, 2147483647 }
 0x192   : > { %v932_v61 = vsel %vm868_vm14, %v2317_v19, 2147483647  ;;  %v2571_v27 = vsel %vm1315_vm12, %v929_v21, %v930_v24  ;;  %v901_v30 = vsel %vm837_vm15, %v2308_v58, 2147483647  ;;  %v902_v32 = vsel %vm838_vm0, %v2317_v19, 2147483647 }
 0x193   : > { %vm1331_vm1 = vcmp.lt.s32.totalorder %v931_v20, %v932_v61  ;;  %1289 = vmin.xlane.f32.xlu1 %v2541_v12  ;;  %v2576_v35 = vpop.xlane.xlu1 %796  ;;  %v2578_v6 = vpop.xlane.xlu0 %751  ;;  %v2580_v8 = vcvt.s32.f32 %v1078_v9  ;;  %v2582_v49 = vcvt.s32.f32 %v1062_v18  ;;  %v1318_v43 = vshra.s32 %v2571_v27, 16 }
 0x194   : > { %v2584_v25 = vsel %vm1331_vm1, %v931_v20, %v932_v61  ;;  %vm869_vm2 = vcmp.eq.f32.partialorder %v2224_v33, %v2576_v35  ;;  %vm870_vm3 = vcmp.eq.f32.partialorder %v2230_v36, %v2576_v35  ;;  %vm839_vm6 = vcmp.eq.f32.partialorder %v2234_v38, %v2578_v6 }
 0x195   : > { %3454 = vst [vmem:[#allocation35_spill] sm:$0xff] %v2582_v49  ;;  %vm840_vm7 = vcmp.eq.f32.partialorder %v2240_v41, %v2578_v6  ;;  %1081 = vmin.xlane.f32.xlu0 %v2580_v8  ;;  %v1334_v21 = vshra.s32 %v2584_v25, 16  ;;  %v2597_v24 = vcvt.s32.f32 %v1318_v43  ;;  %v903_v9 = vsel %vm839_vm6, %v2308_v58, 2147483647 }
 0x196   : > { %v904_v18 = vsel %vm840_vm7, %v2317_v19, 2147483647  ;;  %vm1091_vm9 = vcmp.lt.s32.totalorder %v901_v30, %v902_v32  ;;  %v933_v33 = vsel %vm869_vm2, %v2308_v58, 2147483647  ;;  %v934_v36 = vsel %vm870_vm3, %v2317_v19, 2147483647 }
 0x197   : > { %vm1107_vm8 = vcmp.lt.s32.totalorder %v903_v9, %v904_v18  ;;  %1065 = vmin.xlane.f32.xlu1 %v2582_v49  ;;  %v2604_v38 = vpop.xlane.xlu0 %799  ;;  %v2606_v41 = vpop.xlane.xlu1 %754  ;;  %v2608_v20 = vcvt.s32.f32 %v1334_v21  ;;  %v2612_v61 = vsel %vm1091_vm9, %v901_v30, %v902_v32  ;;  %vm1347_vm10 = vcmp.lt.s32.totalorder %v933_v33, %v934_v36 }
 0x198   : > { %v2610_v43 = vsel %vm1107_vm8, %v903_v9, %v904_v18  ;;  %3457 = vst [vmem:[#allocation38_spill] sm:$0xff] %v2612_v61  ;;  %vm871_vm11 = vcmp.eq.f32.partialorder %v2236_v39, %v2604_v38  ;;  %vm872_vm12 = vcmp.eq.f32.partialorder %v2242_v42, %v2604_v38  ;;  %vm841_vm13 = vcmp.eq.f32.partialorder %v2246_v52, %v2606_v41 }
 0x199   : > { %3455 = vst [vmem:[#allocation36_spill] sm:$0xff] %v2608_v20  ;;  %3456 = vst [vmem:[#allocation37_spill] sm:$0xff] %v2610_v43  ;;  %vm842_vm14 = vcmp.eq.f32.partialorder %v2252_v59, %v2606_v41  ;;  %1337 = vmin.xlane.f32.xlu0 %v2608_v20  ;;  %v1110_v21 = vshra.s32 %v2610_v43, 16  ;;  %v1094_v30 = vshra.s32 %v2612_v61, 16  ;;  %v935_v32 = vsel %vm871_vm11, %v2308_v58, 2147483647 }
 0x19a   : > { %v936_v9 = vsel %vm872_vm12, %v2317_v19, 2147483647  ;;  %v2627_v39 = vsel %vm1347_vm10, %v933_v33, %v934_v36  ;;  %v905_v42 = vsel %vm841_vm13, %v2308_v58, 2147483647  ;;  %v906_v52 = vsel %vm842_vm14, %v2317_v19, 2147483647 }
 0x19b   : > { %vm1363_vm15 = vcmp.lt.s32.totalorder %v935_v32, %v936_v9  ;;  %3458 = vst [vmem:[#allocation39_spill] sm:$0xff] %v2627_v39  ;;  %1321 = vmin.xlane.f32.xlu1 %v2597_v24  ;;  %v2632_v59 = vpop.xlane.xlu1 %802  ;;  %v2634_v18 = vpop.xlane.xlu0 %757  ;;  %v2636_v20 = vcvt.s32.f32 %v1110_v21  ;;  %v2638_v61 = vcvt.s32.f32 %v1094_v30  ;;  %v1350_v49 = vshra.s32 %v2627_v39, 16  ;;  %v3469_v39 = vld [vmem:[#allocation2_spill] sm:$0xff] }
 0x19c   : > { %3459 = vst [vmem:[#allocation40_spill] sm:$0xff] %v2632_v59  ;;  %v2640_v43 = vsel %vm1363_vm15, %v935_v32, %v936_v9  ;;  %vm873_vm0 = vcmp.eq.f32.partialorder %v2248_v53, %v2632_v59  ;;  %vm874_vm1 = vcmp.eq.f32.partialorder %v2254_v62, %v2632_v59  ;;  %vm843_vm2 = vcmp.eq.f32.partialorder %v2258_v4, %v2634_v18 }
 0x19d   : > { %3460 = vst [vmem:[#allocation41_spill] sm:$0xff] %v2636_v20  ;;  %3461 = vst [vmem:[#allocation42_spill] sm:$0xff] %v2638_v61  ;;  %vm844_vm3 = vcmp.eq.f32.partialorder %v2264_v13, %v2634_v18  ;;  %1113 = vmin.xlane.f32.xlu0 %v2636_v20  ;;  %v1366_v33 = vshra.s32 %v2640_v43, 16  ;;  %v2653_v36 = vcvt.s32.f32 %v1350_v49  ;;  %v907_v21 = vsel %vm843_vm2, %v2308_v58, 2147483647 }
 0x19e   : > { %3462 = vst [vmem:[#allocation43_spill] sm:$0xff] %v2640_v43  ;;  %v908_v30 = vsel %vm844_vm3, %v2317_v19, 2147483647  ;;  %vm1123_vm7 = vcmp.lt.s32.totalorder %v905_v42, %v906_v52  ;;  %v937_v53 = vsel %vm873_vm0, %v2308_v58, 2147483647  ;;  %v3479_v43 = vld [vmem:[#allocation7_spill] sm:$0xff] }
 0x19f   : > { %3463 = vst [vmem:[#allocation44_spill] sm:$0xff] %v2653_v36  ;;  %vm1139_vm6 = vcmp.lt.s32.totalorder %v907_v21, %v908_v30  ;;  %v938_v62 = vsel %vm874_vm1, %v2317_v19, 2147483647  ;;  %1097 = vmin.xlane.f32.xlu1 %v2638_v61  ;;  %v2660_v4 = vpop.xlane.xlu0 %805  ;;  %v2662_v13 = vpop.xlane.xlu1 %760  ;;  %v2664_v32 = vcvt.s32.f32 %v1366_v33  ;;  %v2668_v9 = vsel %vm1123_vm7, %v905_v42, %v906_v52  ;;  %v3470_v61 = vld [vmem:[#allocation4_spill] sm:$0xff] }
 0x1a0   : > { %3464 = vst [vmem:[#allocation45_spill] sm:$0xff] %v2660_v4  ;;  %3465 = vst [vmem:[#allocation46_spill] sm:$0xff] %v2662_v13  ;;  %v2666_v49 = vsel %vm1139_vm6, %v907_v21, %v908_v30  ;;  %vm1379_vm8 = vcmp.lt.s32.totalorder %v937_v53, %v938_v62  ;;  %vm875_vm9 = vcmp.eq.f32.partialorder %v2260_v7, %v2660_v4  ;;  %v1126_v42 = vshra.s32 %v2668_v9, 16 }
 0x1a1   : > { %3466 = vst [vmem:[#allocation47_spill] sm:$0xff] %v2664_v32  ;;  %3467 = vst [vmem:[#allocation48_spill] sm:$0xff] %v2666_v49  ;;  %vm876_vm10 = vcmp.eq.f32.partialorder %v3469_v39, %v2660_v4  ;;  %vm845_vm11 = vcmp.eq.f32.partialorder %v2270_v22, %v2662_v13  ;;  %vm846_vm12 = vcmp.eq.f32.partialorder %v3470_v61, %v2662_v13  ;;  %1369 = vmin.xlane.f32.xlu0 %v2664_v32 }
 0x1a2   : > { %3468 = vst [vmem:[#allocation49_spill] sm:$0xff] %v2668_v9  ;;  %v1142_v33 = vshra.s32 %v2666_v49, 16  ;;  %v939_v52 = vsel %vm875_vm9, %v2308_v58, 2147483647  ;;  %v940_v21 = vsel %vm876_vm10, %v2317_v19, 2147483647  ;;  %v2683_v7 = vsel %vm1379_vm8, %v937_v53, %v938_v62 }
 0x1a3   : > { %vm1395_vm13 = vcmp.lt.s32.totalorder %v939_v52, %v940_v21  ;;  %3471 = vst [vmem:[#allocation2_spill] sm:$0xff] %v2683_v7  ;;  %v909_v39 = vsel %vm845_vm11, %v2308_v58, 2147483647  ;;  %v910_v22 = vsel %vm846_vm12, %v2317_v19, 2147483647  ;;  %1353 = vmin.xlane.f32.xlu1 %v2653_v36  ;;  %v2688_v61 = vpop.xlane.xlu1 %808  ;;  %v2690_v30 = vpop.xlane.xlu0 %763  ;;  %v2694_v9 = vcvt.s32.f32 %v1126_v42  ;;  %v3476_v53 = vld [vmem:[#allocation3_spill] sm:$0xff] }
 0x1a4   : > { %3472 = vst [vmem:[#allocation4_spill] sm:$0xff] %v2688_v61  ;;  %3473 = vst [vmem:[#allocation50_spill] sm:$0xff] %v2690_v30  ;;  %v2692_v32 = vcvt.s32.f32 %v1142_v33  ;;  %v2696_v49 = vsel %vm1395_vm13, %v939_v52, %v940_v21  ;;  %v1382_v20 = vshra.s32 %v2683_v7, 16  ;;  %vm877_vm14 = vcmp.eq.f32.partialorder %v3476_v53, %v2688_v61  ;;  %v3477_v62 = vld [vmem:[#allocation5_spill] sm:$0xff]  ;;  %v3478_v36 = vld [vmem:[#allocation6_spill] sm:$0xff] }
 0x1a5   : > { %3475 = vst [vmem:[#allocation52_spill] sm:$0xff] %v2696_v49  ;;  %vm878_vm15 = vcmp.eq.f32.partialorder %v3477_v62, %v2688_v61  ;;  %vm847_vm0 = vcmp.eq.f32.partialorder %v3478_v36, %v2690_v30  ;;  %vm848_vm1 = vcmp.eq.f32.partialorder %v3479_v43, %v2690_v30  ;;  %v1398_v33 = vshra.s32 %v2696_v49, 16  ;;  %v3486_v49 = vld [vmem:[#allocation8_spill] sm:$0xff] }
 0x1a6   : > { %3474 = vst [vmem:[#allocation51_spill] sm:$0xff] %v2692_v32  ;;  %1145 = vmin.xlane.f32.xlu0 %v2692_v32  ;;  %v2709_v42 = vcvt.s32.f32 %v1382_v20  ;;  %v911_v52 = vsel %vm847_vm0, %v2308_v58, 2147483647  ;;  %v912_v21 = vsel %vm848_vm1, %v2317_v19, 2147483647  ;;  %vm1155_vm3 = vcmp.lt.s32.totalorder %v909_v39, %v910_v22 }
 0x1a7   : > { %vm1171_vm2 = vcmp.lt.s32.totalorder %v911_v52, %v912_v21  ;;  %v941_v53 = vsel %vm877_vm14, %v2308_v58, 2147483647  ;;  %v942_v62 = vsel %vm878_vm15, %v2317_v19, 2147483647  ;;  %1129 = vmin.xlane.f32.xlu1 %v2694_v9  ;;  %v2716_v36 = vpop.xlane.xlu0 %811  ;;  %v2718_v43 = vpop.xlane.xlu1 %766  ;;  %v2720_v7 = vcvt.s32.f32 %v1398_v33 }
 0x1a8   : > { %3480 = vst [vmem:[#allocation3_spill] sm:$0xff] %v2709_v42  ;;  %3481 = vst [vmem:[#allocation5_spill] sm:$0xff] %v2716_v36  ;;  %v2722_v20 = vsel %vm1171_vm2, %v911_v52, %v912_v21  ;;  %v2724_v32 = vsel %vm1155_vm3, %v909_v39, %v910_v22  ;;  %vm1411_vm6 = vcmp.lt.s32.totalorder %v941_v53, %v942_v62  ;;  %vm1475_vm0 = vcmp.lt.f32.partialorder %v2340_v34, inf }
 0x1a9   : > { %3482 = vst [vmem:[#allocation6_spill] sm:$0xff] %v2718_v43  ;;  %3483 = vst [vmem:[#allocation7_spill] sm:$0xff] %v2720_v7  ;;  %vm879_vm7 = vcmp.eq.f32.partialorder %v2284_v47, %v2716_v36  ;;  %vm880_vm8 = vcmp.eq.f32.partialorder %v3486_v49, %v2716_v36  ;;  %vm849_vm9 = vcmp.eq.f32.partialorder %v2294_v16, %v2718_v43  ;;  %v1174_v33 = vshra.s32 %v2722_v20, 16 }
 0x1aa   : > { %3484 = vst [vmem:[#allocation53_spill] sm:$0xff] %v2722_v20  ;;  %3485 = vst [vmem:[#allocation54_spill] sm:$0xff] %v2724_v32  ;;  %vm850_vm10 = vcmp.eq.f32.partialorder %v2300_v37, %v2718_v43  ;;  %1401 = vmin.xlane.f32.xlu0 %v2720_v7  ;;  %v1158_v39 = vshra.s32 %v2724_v32, 16  ;;  %v943_v22 = vsel %vm879_vm7, %v2308_v58, 2147483647  ;;  %v2739_v47 = vsel %vm1411_vm6, %v941_v53, %v942_v62  ;;  %v3489_v32 = vld [vmem:[#allocation9_spill] sm:$0xff] }
 0x1ab   : > { %v944_v52 = vsel %vm880_vm8, %v2317_v19, 2147483647  ;;  %3487 = vst [vmem:[#allocation8_spill] sm:$0xff] %v2739_v47  ;;  %v913_v49 = vsel %vm849_vm9, %v2308_v58, 2147483647  ;;  %1385 = vmin.xlane.f32.xlu1 %v2709_v42  ;;  %v2744_v37 = vpop.xlane.xlu1 %814  ;;  %v2746_v21 = vcvt.s32.f32 %v1174_v33  ;;  %v3490_v20 = vld [vmem:[#allocation10_spill] sm:$0xff] }
 0x1ac   : > { %vm1427_vm11 = vcmp.lt.s32.totalorder %v943_v22, %v944_v52  ;;  %v914_v16 = vsel %vm850_vm10, %v2317_v19, 2147483647  ;;  %3488 = vst [vmem:[#allocation55_spill] sm:$0xff] %v2744_v37  ;;  %vm881_vm12 = vcmp.eq.f32.partialorder %v3489_v32, %v2744_v37  ;;  %vm882_vm13 = vcmp.eq.f32.partialorder %v3490_v20, %v2744_v37 }
 0x1ad   : > { %v2748_v7 = vsel %vm1427_vm11, %v943_v22, %v944_v52  ;;  %vm1187_vm14 = vcmp.lt.s32.totalorder %v913_v49, %v914_v16  ;;  %v2756_v62 = vcvt.s32.f32 %v1158_v39  ;;  %v1414_v42 = vshra.s32 %v2739_v47, 16 }
 0x1ae   : > { %v1430_v53 = vshra.s32 %v2748_v7, 16  ;;  %1177 = vmin.xlane.f32.xlu0 %v2746_v21  ;;  %v945_v33 = vsel %vm881_vm12, %v2308_v58, 2147483647  ;;  %v946_v22 = vsel %vm882_vm13, %v2317_v19, 2147483647  ;;  %v2763_v32 = vsel %vm1187_vm14, %v913_v49, %v914_v16  ;;  %v1590_v16 = vld [vmem:[%s2314_s29 + $0x10] sm:$0xff] }
 0x1af   : > { %1161 = vmin.xlane.f32.xlu1 %v2756_v62  ;;  %vm1443_vm15 = vcmp.lt.s32.totalorder %v945_v33, %v946_v22  ;;  %v2767_v20 = vcvt.s32.f32 %v1414_v42  ;;  %v1190_v39 = vshra.s32 %v2763_v32, 16  ;;  %v1604_v42 = vld [vmem:[%s2314_s29 + $0x80] sm:$0xff]  ;;  %vm1461_vm1 = vcmp.lt.f32.partialorder %v2361_v10, inf }
 0x1b0   : > { %v2761_v52 = vcvt.s32.f32 %v1430_v53  ;;  %v2770_v47 = vsel %vm1443_vm15, %v945_v33, %v946_v22  ;;  %v1507_v53 = vsel %vm1475_vm0, %v2340_v34, inf  ;;  %v1589_v33 = vld [vmem:[%s2314_s29 + $0x8] sm:$0xff]  ;;  %vm1460_vm2 = vcmp.lt.f32.partialorder %v2359_v51, inf }
 0x1b1   : > { %3491 = vst [vmem:[#allocation9_spill] sm:$0xff] %v2770_v47  ;;  %v2773_v58 = vcvt.s32.f32 %v1190_v39  ;;  %v1446_v19 = vshra.s32 %v2770_v47, 16  ;;  %v1636_v22 = vadd.f32 %v1604_v42, %v1507_v53  ;;  %v1493_v39 = vsel %vm1461_vm1, %v2361_v10, inf  ;;  %v1592_v42 = vld [vmem:[%s2314_s29 + $0x20] sm:$0xff] }
 0x1b2   : > { %1433 = vmin.xlane.f32.xlu0 %v2761_v52  ;;  %v1492_v34 = vsel %vm1460_vm2, %v2359_v51, inf  ;;  %vm1477_vm3 = vcmp.lt.f32.partialorder %v2384_v31, inf  ;;  %vm1476_vm6 = vcmp.lt.f32.partialorder %v2338_v45, inf  ;;  %vm1463_vm7 = vcmp.lt.f32.partialorder %v2411_v60, inf }
 0x1b3   : > { %1417 = vmin.xlane.f32.xlu1 %v2767_v20  ;;  %3492 = vst [vmem:[#allocation10_spill] sm:$0xff] %v2773_v58  ;;  %v2777_v49 = vcvt.s32.f32 %v1446_v19  ;;  %v1606_v19 = vld [vmem:[%s2314_s29 + $0x90] sm:$0xff]  ;;  %1668 = vst.msk [vmem:[%s2331_s6 + $0x80] sm:$0xff] %vm1555_vm5, %v1636_v22  ;;  %v1621_v53 = vadd.f32 %v1589_v33, %v1492_v34  ;;  %v1509_v10 = vsel %vm1477_vm3, %v2384_v31, inf  ;;  %v1495_v34 = vsel %vm1463_vm7, %v2411_v60, inf  ;;  %v1608_v33 = vld [vmem:[%s2314_s29 + $0xa0] sm:$0xff] }
 0x1b4   : > { %v1638_v51 = vadd.f32 %v1606_v19, %v1509_v10  ;;  %vm1462_vm8 = vcmp.lt.f32.partialorder %v2386_v56, inf  ;;  %v1607_v22 = vld [vmem:[%s2314_s29 + $0x98] sm:$0xff]  ;;  %vm1479_vm9 = vcmp.lt.f32.partialorder %v2436_v2, inf  ;;  %vm1478_vm10 = vcmp.lt.f32.partialorder %v2409_v1, inf  ;;  %v1594_v10 = vld [vmem:[%s2314_s29 + $0x30] sm:$0xff] }
 0x1b5   : > { %3493 = vst [vmem:[#allocation56_spill] sm:$0xff] %v2777_v49  ;;  %1653 = vst.msk [vmem:[%s2331_s6 + $0x8] sm:$0xff] %vm1555_vm5, %v1621_v53  ;;  %v1494_v31 = vsel %vm1462_vm8, %v2386_v56, inf  ;;  %v1510_v19 = vsel %vm1478_vm10, %v2409_v1, inf  ;;  %vm1465_vm11 = vcmp.lt.f32.partialorder %v2466_v28, inf  ;;  %vm3395_vm12 = vcmp.lt.f32.partialorder %v2438_v5, inf }
 0x1b6   : > { %1670 = vst.msk [vmem:[%s2331_s6 + $0x90] sm:$0xff] %vm1555_vm5, %v1638_v51  ;;  %v1639_v53 = vadd.f32 %v1607_v22, %v1510_v19  ;;  %vm3393_vm13 = vcmp.lt.f32.partialorder %v2492_v14, inf  ;;  %vm3394_vm14 = vcmp.lt.f32.partialorder %v2464_v11, inf  ;;  %vm3399_vm15 = vcmp.lt.f32.partialorder %v2522_v48, inf }
 0x1b7   : > { %1193 = vmin.xlane.f32.xlu1 %v2773_v58  ;;  %v1622_v58 = vadd.f32 %v1590_v16, %v1493_v39  ;;  %v1508_v16 = vsel %vm1476_vm6, %v2338_v45, inf  ;;  %v1591_v39 = vld [vmem:[%s2314_s29 + $0x18] sm:$0xff]  ;;  %v1624_v45 = vadd.f32 %v1592_v42, %v1495_v34  ;;  %v1593_v42 = vld [vmem:[%s2314_s29 + $0x28] sm:$0xff]  ;;  %v1496_v34 = vsel %vm3395_vm12, %v2438_v5, inf }
 0x1b8   : > { %1671 = vst.msk [vmem:[%s2331_s6 + $0x98] sm:$0xff] %vm1555_vm5, %v1639_v53  ;;  %v1513_v22 = vsel %vm3393_vm13, %v2492_v14, inf  ;;  %vm3396_vm13 = vcmp.lt.f32.partialorder %v2494_v17, inf  ;;  %v1611_v53 = vld [vmem:[%s2314_s29 + $0xb8] sm:$0xff]  ;;  %vm3398_vm12 = vcmp.lt.f32.partialorder %v2520_v23, inf }
 0x1b9   : > { %1654 = vst.msk [vmem:[%s2331_s6 + $0x10] sm:$0xff] %vm1555_vm5, %v1622_v58  ;;  %v1623_v58 = vadd.f32 %v1591_v39, %v1494_v31  ;;  %1656 = vst.msk [vmem:[%s2331_s6 + $0x20] sm:$0xff] %vm1555_vm5, %v1624_v45  ;;  %v1497_v31 = vsel %vm1465_vm11, %v2466_v28, inf  ;;  %v1596_v45 = vld [vmem:[%s2314_s29 + $0x40] sm:$0xff] }
 0x1ba   : > { %v1626_v39 = vadd.f32 %v1594_v10, %v1497_v31  ;;  %v1512_v10 = vsel %vm3394_vm14, %v2464_v11, inf  ;;  %vm3397_vm14 = vcmp.lt.f32.partialorder %v2548_v26, inf }
 0x1bb   : > { %1449 = vmin.xlane.f32.xlu1 %v2777_v49  ;;  %v1605_v49 = vld [vmem:[%s2314_s29 + $0x88] sm:$0xff]  ;;  %1655 = vst.msk [vmem:[%s2331_s6 + $0x18] sm:$0xff] %vm1555_vm5, %v1623_v58  ;;  %v1595_v58 = vld [vmem:[%s2314_s29 + $0x38] sm:$0xff] }
 0x1bc   : > { %v1637_v47 = vadd.f32 %v1605_v49, %v1508_v16  ;;  %v1511_v49 = vsel %vm1479_vm9, %v2436_v2, inf  ;;  %v1609_v16 = vld [vmem:[%s2314_s29 + $0xa8] sm:$0xff]  ;;  %1658 = vst.msk [vmem:[%s2331_s6 + $0x30] sm:$0xff] %vm1555_vm5, %v1626_v39  ;;  %v1515_v39 = vsel %vm3397_vm14, %v2548_v26, inf  ;;  %vm3400_vm14 = vcmp.lt.f32.partialorder %v2550_v29, inf }
 0x1bd   : > { %v1640_v51 = vadd.f32 %v1608_v33, %v1511_v49  ;;  %v1625_v33 = vadd.f32 %v1593_v42, %v1496_v34  ;;  %v1641_v19 = vadd.f32 %v1609_v16, %v1512_v10  ;;  %v1499_v42 = vsel %vm3399_vm15, %v2522_v48, inf }
 0x1be   : > { %1669 = vst.msk [vmem:[%s2331_s6 + $0x88] sm:$0xff] %vm1555_vm5, %v1637_v47  ;;  %v1610_v47 = vld [vmem:[%s2314_s29 + $0xb0] sm:$0xff]  ;;  %v1628_v31 = vadd.f32 %v1596_v45, %v1499_v42  ;;  %v1498_v34 = vsel %vm3396_vm13, %v2494_v17, inf  ;;  %v1514_v45 = vsel %vm3398_vm12, %v2520_v23, inf  ;;  %vm3403_vm13 = vcmp.lt.f32.partialorder %v2578_v6, inf }
 0x1bf   : > { %1672 = vst.msk [vmem:[%s2331_s6 + $0xa0] sm:$0xff] %vm1555_vm5, %v1640_v51  ;;  %v1642_v49 = vadd.f32 %v1610_v47, %v1513_v22  ;;  %v1612_v51 = vld [vmem:[%s2314_s29 + $0xc0] sm:$0xff]  ;;  %1657 = vst.msk [vmem:[%s2331_s6 + $0x28] sm:$0xff] %vm1555_vm5, %v1625_v33  ;;  %v1598_v47 = vld [vmem:[%s2314_s29 + $0x50] sm:$0xff]  ;;  %v1627_v16 = vadd.f32 %v1595_v58, %v1498_v34  ;;  %v1643_v10 = vadd.f32 %v1611_v53, %v1514_v45  ;;  %v1501_v58 = vsel %vm3403_vm13, %v2578_v6, inf }
 0x1c0   : > { %1673 = vst.msk [vmem:[%s2331_s6 + $0xa8] sm:$0xff] %vm1555_vm5, %v1641_v19  ;;  %v1597_v33 = vld [vmem:[%s2314_s29 + $0x48] sm:$0xff]  ;;  %1660 = vst.msk [vmem:[%s2331_s6 + $0x40] sm:$0xff] %vm1555_vm5, %v1628_v31  ;;  %v1644_v22 = vadd.f32 %v1612_v51, %v1515_v39  ;;  %v1630_v42 = vadd.f32 %v1598_v47, %v1501_v58  ;;  %v1500_v34 = vsel %vm3400_vm14, %v2550_v29, inf  ;;  %vm3401_vm12 = vcmp.lt.f32.partialorder %v2604_v38, inf  ;;  %v1600_v51 = vld [vmem:[%s2314_s29 + $0x60] sm:$0xff] }
 0x1c1   : > { %1674 = vst.msk [vmem:[%s2331_s6 + $0xb0] sm:$0xff] %vm1555_vm5, %v1642_v49  ;;  %v1614_v49 = vld [vmem:[%s2314_s29 + $0xd0] sm:$0xff]  ;;  %v1613_v19 = vld [vmem:[%s2314_s29 + $0xc8] sm:$0xff]  ;;  %1659 = vst.msk [vmem:[%s2331_s6 + $0x38] sm:$0xff] %vm1555_vm5, %v1627_v16  ;;  %vm3402_vm15 = vcmp.lt.f32.partialorder %v2576_v35, inf  ;;  %v1629_v53 = vadd.f32 %v1597_v33, %v1500_v34  ;;  %v1517_v31 = vsel %vm3401_vm12, %v2604_v38, inf }
 0x1c2   : > { %1676 = vst.msk [vmem:[%s2331_s6 + $0xc0] sm:$0xff] %vm1555_vm5, %v1644_v22  ;;  %1675 = vst.msk [vmem:[%s2331_s6 + $0xb8] sm:$0xff] %vm1555_vm5, %v1643_v10  ;;  %v1516_v47 = vsel %vm3402_vm15, %v2576_v35, inf  ;;  %vm3407_vm14 = vcmp.lt.f32.partialorder %v2634_v18, inf  ;;  %v1599_v16 = vld [vmem:[%s2314_s29 + $0x58] sm:$0xff]  ;;  %v1646_v39 = vadd.f32 %v1614_v49, %v1517_v31  ;;  %vm3404_vm12 = vcmp.lt.f32.partialorder %v2606_v41, inf }
 0x1c3   : > { %1662 = vst.msk [vmem:[%s2331_s6 + $0x50] sm:$0xff] %vm1555_vm5, %v1630_v42  ;;  %v1645_v45 = vadd.f32 %v1613_v19, %v1516_v47  ;;  %v1503_v33 = vsel %vm3407_vm14, %v2634_v18, inf  ;;  %v1616_v22 = vld [vmem:[%s2314_s29 + $0xe0] sm:$0xff]  ;;  %v1615_v10 = vld [vmem:[%s2314_s29 + $0xd8] sm:$0xff]  ;;  %1661 = vst.msk [vmem:[%s2331_s6 + $0x48] sm:$0xff] %vm1555_vm5, %v1629_v53  ;;  %v1502_v34 = vsel %vm3404_vm12, %v2606_v41, inf }
 0x1c4   : > { %v1632_v58 = vadd.f32 %v1600_v51, %v1503_v33  ;;  %vm3405_vm15 = vcmp.lt.f32.partialorder %v2660_v4, inf  ;;  %vm3406_vm13 = vcmp.lt.f32.partialorder %v2632_v59, inf  ;;  %v1602_v49 = vld [vmem:[%s2314_s29 + $0x70] sm:$0xff]  ;;  %1678 = vst.msk [vmem:[%s2331_s6 + $0xd0] sm:$0xff] %vm1555_vm5, %v1646_v39  ;;  %v1631_v19 = vadd.f32 %v1599_v16, %v1502_v34  ;;  %v1601_v53 = vld [vmem:[%s2314_s29 + $0x68] sm:$0xff] }
 0x1c5   : > { %1677 = vst.msk [vmem:[%s2331_s6 + $0xc8] sm:$0xff] %vm1555_vm5, %v1645_v45  ;;  %v1519_v42 = vsel %vm3405_vm15, %v2660_v4, inf  ;;  %v1518_v51 = vsel %vm3406_vm13, %v2632_v59, inf  ;;  %vm3409_vm12 = vcmp.lt.f32.partialorder %v2690_v30, inf  ;;  %vm3408_vm15 = vcmp.lt.f32.partialorder %v2662_v13, inf  ;;  %v1618_v39 = vld [vmem:[%s2314_s29 + $0xf0] sm:$0xff] }
 0x1c6   : > { %1664 = vst.msk [vmem:[%s2331_s6 + $0x60] sm:$0xff] %vm1555_vm5, %v1632_v58  ;;  %v1648_v31 = vadd.f32 %v1616_v22, %v1519_v42  ;;  %v1647_v47 = vadd.f32 %v1615_v10, %v1518_v51  ;;  %v1505_v16 = vsel %vm3409_vm12, %v2690_v30, inf  ;;  %v1617_v45 = vld [vmem:[%s2314_s29 + $0xe8] sm:$0xff]  ;;  %1663 = vst.msk [vmem:[%s2331_s6 + $0x58] sm:$0xff] %vm1555_vm5, %v1631_v19  ;;  %v1504_v34 = vsel %vm3408_vm15, %v2662_v13, inf  ;;  %v1603_v22 = vld [vmem:[%s2314_s29 + $0x78] sm:$0xff] }
 0x1c7   : > { %v1634_v33 = vadd.f32 %v1602_v49, %v1505_v16  ;;  %vm1489_vm13 = vcmp.lt.f32.partialorder %v2716_v36, inf  ;;  %vm3413_vm14 = vcmp.lt.f32.partialorder %v2688_v61, inf  ;;  %v1633_v10 = vadd.f32 %v1601_v53, %v1504_v34  ;;  %v1619_v19 = vld [vmem:[%s2314_s29 + $0xf8] sm:$0xff]  ;;  %v3524_v30 = vld [vmem:[#allocation52_spill] sm:$0xff]  ;;  %v3526_v59 = vld [vmem:[#allocation2_spill] sm:$0xff] }
 0x1c8   : > { %1680 = vst.msk [vmem:[%s2331_s6 + $0xe0] sm:$0xff] %vm1555_vm5, %v1648_v31  ;;  %1679 = vst.msk [vmem:[%s2331_s6 + $0xd8] sm:$0xff] %vm1555_vm5, %v1647_v47  ;;  %v1521_v58 = vsel %vm1489_vm13, %v2716_v36, inf  ;;  %v1520_v49 = vsel %vm3413_vm14, %v2688_v61, inf  ;;  %vm3410_vm15 = vcmp.lt.f32.partialorder %v2718_v43, inf  ;;  %vm3411_vm12 = vcmp.lt.f32.partialorder %v2744_v37, inf }
 0x1c9   : > { %1666 = vst.msk [vmem:[%s2331_s6 + $0x70] sm:$0xff] %vm1555_vm5, %v1634_v33  ;;  %v1650_v42 = vadd.f32 %v1618_v39, %v1521_v58  ;;  %v1649_v51 = vadd.f32 %v1617_v45, %v1520_v49  ;;  %v1506_v53 = vsel %vm3410_vm15, %v2718_v43, inf  ;;  %1665 = vst.msk [vmem:[%s2331_s6 + $0x68] sm:$0xff] %vm1555_vm5, %v1633_v10  ;;  %v1522_v47 = vsel %vm3411_vm12, %v2744_v37, inf  ;;  %v3494_v39 = vld [vmem:[#allocation14_spill] sm:$0xff]  ;;  %v3496_v58 = vld [vmem:[#allocation17_spill] sm:$0xff] }
 0x1ca   : > { %v1635_v31 = vadd.f32 %v1603_v22, %v1506_v53  ;;  %v1651_v16 = vadd.f32 %v1619_v19, %v1522_v47  ;;  %v949_v45 = vand.u32 65535, %v3494_v39  ;;  %v3495_v10 = vld [vmem:[#allocation18_spill] sm:$0xff]  ;;  %v981_v19 = vand.u32 65535, %v2390_v46  ;;  %v3499_v46 = vld [vmem:[#allocation19_spill] sm:$0xff]  ;;  %v3520_v36 = vld [vmem:[#allocation48_spill] sm:$0xff] }
 0x1cb   : > { %1682 = vst.msk [vmem:[%s2331_s6 + $0xf0] sm:$0xff] %vm1555_vm5, %v1650_v42  ;;  %1681 = vst.msk [vmem:[%s2331_s6 + $0xe8] sm:$0xff] %vm1555_vm5, %v1649_v51  ;;  %v1205_v22 = vand.u32 65535, %v3495_v10  ;;  %v3497_v39 = vld [vmem:[#allocation22_spill] sm:$0xff]  ;;  %v3518_v61 = vld [vmem:[#allocation39_spill] sm:$0xff] }
 0x1cc   : > { %1667 = vst.msk [vmem:[%s2331_s6 + $0x78] sm:$0xff] %vm1555_vm5, %v1635_v31  ;;  %1683 = vst.msk [vmem:[%s2331_s6 + $0xf8] sm:$0xff] %vm1555_vm5, %v1651_v16  ;;  %v951_v34 = vcvt.s32.f32 %v949_v45  ;;  %v965_v31 = vand.u32 65535, %v2402_v40  ;;  %v983_v16 = vcvt.s32.f32 %v981_v19  ;;  %v1237_v45 = vand.u32 65535, %v3497_v39  ;;  %v3501_v19 = vld [vmem:[#allocation25_spill] sm:$0xff]  ;;  %v3502_v39 = vld [vmem:[#allocation24_spill] sm:$0xff] }
 0x1cd   : > { %v1207_v51 = vcvt.s32.f32 %v1205_v22  ;;  %v1013_v37 = vand.u32 65535, %v3501_v19  ;;  %v3503_v43 = vld [vmem:[#allocation26_spill] sm:$0xff]  ;;  %v3504_v19 = vld [vmem:[#allocation27_spill] sm:$0xff]  ;;  %v3522_v13 = vld [vmem:[#allocation49_spill] sm:$0xff] }
 0x1ce   : > { %v3529_v4 = vld [vmem:[#allocation54_spill] sm:$0xff] }
 0x1fd   : > { %v2998_v33 = vpop.xlane.xlu0 %953 }
 0x1fe   : > { %vm955_vm15 = vcmp.eq.f32.partialorder %v3496_v58, %v2998_v33  ;;  %v967_v58 = vcvt.s32.f32 %v965_v31 }
 0x1ff   : > { %v956_v49 = vsel %vm955_vm15, %v951_v34, inf  ;;  %v3498_v34 = vld [vmem:[#allocation21_spill] sm:$0xff] }
 0x200   : > { %957 = vmin.xlane.f32.xlu0 %v956_v49  ;;  %v1221_v49 = vand.u32 65535, %v3499_v46  ;;  %v997_v46 = vand.u32 65535, %v3503_v43  ;;  %v1253_v43 = vand.u32 65535, %v2459_v3 }
 0x202   : > { %v3003_v42 = vpop.xlane.xlu0 %1209  ;;  %v1223_v31 = vcvt.s32.f32 %v1221_v49  ;;  %v999_v49 = vcvt.s32.f32 %v997_v46  ;;  %v1255_v46 = vcvt.s32.f32 %v1253_v43 }
 0x203   : > { %vm1211_vm12 = vcmp.eq.f32.partialorder %v2388_v44, %v3003_v42  ;;  %v3500_v44 = vld [vmem:[#allocation23_spill] sm:$0xff] }
 0x204   : > { %v1212_v53 = vsel %vm1211_vm12, %v1207_v51, inf }
 0x205   : > { %1213 = vmin.xlane.f32.xlu0 %v1212_v53  ;;  %v1239_v53 = vcvt.s32.f32 %v1237_v45  ;;  %v1015_v45 = vcvt.s32.f32 %v1013_v37 }
 0x206   : > { %v3009_v47 = vpop.xlane.xlu0 %985 }
 0x207   : > { %vm987_vm15 = vcmp.eq.f32.partialorder %v3498_v34, %v3009_v47 }
 0x208   : > { %v3014_v10 = vpop.xlane.xlu1 %969  ;;  %v988_v22 = vsel %vm987_vm15, %v983_v16, inf }
 0x209   : > { %989 = vmin.xlane.f32.xlu0 %v988_v22  ;;  %vm971_vm12 = vcmp.eq.f32.partialorder %v3500_v44, %v3014_v10  ;;  %v1269_v44 = vand.u32 65535, %v2472_v63 }
 0x20a   : > { %v972_v40 = vsel %vm971_vm12, %v967_v58, inf  ;;  %v3019_v51 = vpop.xlane.xlu0 %1241 }
 0x20b   : > { %973 = vmin.xlane.f32.xlu1 %v972_v40  ;;  %vm1243_vm14 = vcmp.eq.f32.partialorder %v3502_v39, %v3019_v51  ;;  %v1271_v37 = vcvt.s32.f32 %v1269_v44 }
 0x20c   : > { %v3024_v34 = vpop.xlane.xlu1 %1225  ;;  %v1244_v16 = vsel %vm1243_vm14, %v1239_v53, inf }
 0x20d   : > { %1245 = vmin.xlane.f32.xlu0 %v1244_v16  ;;  %vm1227_vm15 = vcmp.eq.f32.partialorder %v2407_v57, %v3024_v34  ;;  %v3505_v16 = vld [vmem:[#allocation29_spill] sm:$0xff] }
 0x20e   : > { %v1228_v22 = vsel %vm1227_vm15, %v1223_v31, inf  ;;  %v3029_v58 = vpop.xlane.xlu0 %1017  ;;  %v1045_v63 = vand.u32 65535, %v3505_v16  ;;  %v3506_v31 = vld [vmem:[#allocation28_spill] sm:$0xff]  ;;  %v1285_v16 = vand.u32 65535, %v2515_v15 }
 0x20f   : > { %1229 = vmin.xlane.f32.xlu1 %v1228_v22  ;;  %vm1019_vm12 = vcmp.eq.f32.partialorder %v2468_v55, %v3029_v58 }
 0x210   : > { %v3034_v40 = vpop.xlane.xlu1 %1001  ;;  %v1020_v53 = vsel %vm1019_vm12, %v1015_v45, inf  ;;  %v3507_v45 = vld [vmem:[#allocation30_spill] sm:$0xff]  ;;  %v1047_v44 = vcvt.s32.f32 %v1045_v63 }
 0x211   : > { %1021 = vmin.xlane.f32.xlu0 %v1020_v53  ;;  %vm1003_vm14 = vcmp.eq.f32.partialorder %v3504_v19, %v3034_v40  ;;  %v1029_v3 = vand.u32 65535, %v3507_v45  ;;  %v1301_v19 = vand.u32 65535, %v2528_v54  ;;  %v3510_v45 = vld [vmem:[#allocation32_spill] sm:$0xff] }
 0x212   : > { %v1004_v57 = vsel %vm1003_vm14, %v999_v49, inf  ;;  %v3039_v39 = vpop.xlane.xlu0 %1273 }
 0x213   : > { %1005 = vmin.xlane.f32.xlu1 %v1004_v57  ;;  %vm1275_vm15 = vcmp.eq.f32.partialorder %v3506_v31, %v3039_v39  ;;  %v1031_v43 = vcvt.s32.f32 %v1029_v3  ;;  %v3508_v31 = vld [vmem:[#allocation31_spill] sm:$0xff]  ;;  %v1303_v63 = vcvt.s32.f32 %v1301_v19  ;;  %v1287_v3 = vcvt.s32.f32 %v1285_v16 }
 0x214   : > { %v3044_v55 = vpop.xlane.xlu1 %1257  ;;  %v1276_v22 = vsel %vm1275_vm15, %v1271_v37, inf }
 0x215   : > { %1277 = vmin.xlane.f32.xlu0 %v1276_v22  ;;  %vm1259_vm12 = vcmp.eq.f32.partialorder %v2485_v0, %v3044_v55 }
 0x216   : > { %v1260_v53 = vsel %vm1259_vm12, %v1255_v46, inf  ;;  %v3049_v49 = vpop.xlane.xlu0 %1049  ;;  %v3509_v46 = vld [vmem:[#allocation33_spill] sm:$0xff] }
 0x217   : > { %1261 = vmin.xlane.f32.xlu1 %v1260_v53  ;;  %vm1051_vm14 = vcmp.eq.f32.partialorder %v2524_v50, %v3049_v49  ;;  %v1077_v54 = vand.u32 65535, %v3509_v46  ;;  %v1317_v46 = vand.u32 65535, %v2571_v27 }
 0x218   : > { %v3054_v57 = vpop.xlane.xlu1 %1033  ;;  %v1052_v37 = vsel %vm1051_vm14, %v1047_v44, inf  ;;  %v3511_v44 = vld [vmem:[#allocation34_spill] sm:$0xff] }
 0x219   : > { %1053 = vmin.xlane.f32.xlu0 %v1052_v37  ;;  %vm1035_vm15 = vcmp.eq.f32.partialorder %v3508_v31, %v3054_v57  ;;  %v1061_v15 = vand.u32 65535, %v3511_v44  ;;  %v1079_v19 = vcvt.s32.f32 %v1077_v54  ;;  %v1333_v31 = vand.u32 65535, %v2584_v25  ;;  %v3514_v44 = vld [vmem:[#allocation36_spill] sm:$0xff] }
 0x21a   : > { %v1036_v0 = vsel %vm1035_vm15, %v1031_v43, inf  ;;  %v3059_v22 = vpop.xlane.xlu0 %1305 }
 0x21b   : > { %1037 = vmin.xlane.f32.xlu1 %v1036_v0  ;;  %vm1307_vm12 = vcmp.eq.f32.partialorder %v3510_v45, %v3059_v22  ;;  %v1063_v16 = vcvt.s32.f32 %v1061_v15  ;;  %v3512_v45 = vld [vmem:[#allocation35_spill] sm:$0xff]  ;;  %v1335_v54 = vcvt.s32.f32 %v1333_v31  ;;  %v1319_v15 = vcvt.s32.f32 %v1317_v46 }
 0x21c   : > { %v3064_v50 = vpop.xlane.xlu1 %1289  ;;  %v1308_v53 = vsel %vm1307_vm12, %v1303_v63, inf }
 0x21d   : > { %1309 = vmin.xlane.f32.xlu0 %v1308_v53  ;;  %vm1291_vm14 = vcmp.eq.f32.partialorder %v2541_v12, %v3064_v50 }
 0x21e   : > { %v1292_v37 = vsel %vm1291_vm14, %v1287_v3, inf  ;;  %v3069_v43 = vpop.xlane.xlu0 %1081  ;;  %v3513_v3 = vld [vmem:[#allocation37_spill] sm:$0xff] }
 0x21f   : > { %1293 = vmin.xlane.f32.xlu1 %v1292_v37  ;;  %vm1083_vm15 = vcmp.eq.f32.partialorder %v2580_v8, %v3069_v43  ;;  %v1109_v25 = vand.u32 65535, %v3513_v3 }
 0x220   : > { %v3074_v0 = vpop.xlane.xlu1 %1065  ;;  %v1084_v63 = vsel %vm1083_vm15, %v1079_v19, inf  ;;  %v3515_v19 = vld [vmem:[#allocation38_spill] sm:$0xff] }
 0x221   : > { %1085 = vmin.xlane.f32.xlu0 %v1084_v63  ;;  %vm1067_vm12 = vcmp.eq.f32.partialorder %v3512_v45, %v3074_v0  ;;  %v1093_v27 = vand.u32 65535, %v3515_v19  ;;  %v1111_v31 = vcvt.s32.f32 %v1109_v25  ;;  %v3516_v45 = vld [vmem:[#allocation43_spill] sm:$0xff]  ;;  %v1349_v19 = vand.u32 65535, %v3518_v61 }
 0x222   : > { %v1068_v12 = vsel %vm1067_vm12, %v1063_v16, inf  ;;  %v3079_v53 = vpop.xlane.xlu0 %1337  ;;  %v1365_v3 = vand.u32 65535, %v3516_v45  ;;  %v1141_v45 = vand.u32 65535, %v3520_v36  ;;  %v1125_v61 = vand.u32 65535, %v3522_v13 }
 0x223   : > { %1069 = vmin.xlane.f32.xlu1 %v1068_v12  ;;  %vm1339_vm14 = vcmp.eq.f32.partialorder %v3514_v44, %v3079_v53  ;;  %v3517_v12 = vld [vmem:[#allocation41_spill] sm:$0xff]  ;;  %v1095_v46 = vcvt.s32.f32 %v1093_v27  ;;  %v1351_v27 = vcvt.s32.f32 %v1349_v19  ;;  %v1397_v36 = vand.u32 65535, %v3524_v30 }
 0x224   : > { %v3084_v8 = vpop.xlane.xlu1 %1321  ;;  %v1340_v37 = vsel %vm1339_vm14, %v1335_v54, inf  ;;  %v1367_v25 = vcvt.s32.f32 %v1365_v3  ;;  %v1143_v3 = vcvt.s32.f32 %v1141_v45  ;;  %v1127_v19 = vcvt.s32.f32 %v1125_v61 }
 0x225   : > { %1341 = vmin.xlane.f32.xlu0 %v1340_v37  ;;  %vm1323_vm15 = vcmp.eq.f32.partialorder %v2597_v24, %v3084_v8  ;;  %v3519_v37 = vld [vmem:[#allocation42_spill] sm:$0xff]  ;;  %v1381_v13 = vand.u32 65535, %v3526_v59  ;;  %v1399_v45 = vcvt.s32.f32 %v1397_v36  ;;  %v1157_v59 = vand.u32 65535, %v3529_v4 }
 0x226   : > { %v1324_v63 = vsel %vm1323_vm15, %v1319_v15, inf  ;;  %v3089_v16 = vpop.xlane.xlu0 %1113 }
 0x227   : > { %1325 = vmin.xlane.f32.xlu1 %v1324_v63  ;;  %vm1115_vm12 = vcmp.eq.f32.partialorder %v3517_v12, %v3089_v16  ;;  %v3521_v63 = vld [vmem:[#allocation47_spill] sm:$0xff]  ;;  %v1383_v61 = vcvt.s32.f32 %v1381_v13  ;;  %v1159_v13 = vcvt.s32.f32 %v1157_v59  ;;  %v1189_v59 = vand.u32 65535, %v2763_v32 }
 0x228   : > { %v3094_v44 = vpop.xlane.xlu1 %1097  ;;  %v1116_v54 = vsel %vm1115_vm12, %v1111_v31, inf }
 0x229   : > { %1117 = vmin.xlane.f32.xlu0 %v1116_v54  ;;  %vm1099_vm14 = vcmp.eq.f32.partialorder %v3519_v37, %v3094_v44  ;;  %v3523_v54 = vld [vmem:[#allocation44_spill] sm:$0xff] }
 0x22a   : > { %v1100_v24 = vsel %vm1099_vm14, %v1095_v46, inf  ;;  %v3099_v15 = vpop.xlane.xlu0 %1369 }
 0x22b   : > { %1101 = vmin.xlane.f32.xlu1 %v1100_v24  ;;  %vm1371_vm15 = vcmp.eq.f32.partialorder %v3521_v63, %v3099_v15  ;;  %v3525_v24 = vld [vmem:[#allocation51_spill] sm:$0xff] }
 0x22c   : > { %v3104_v12 = vpop.xlane.xlu1 %1353  ;;  %v1372_v31 = vsel %vm1371_vm15, %v1367_v25, inf }
 0x22d   : > { %1373 = vmin.xlane.f32.xlu0 %v1372_v31  ;;  %vm1355_vm12 = vcmp.eq.f32.partialorder %v3523_v54, %v3104_v12  ;;  %v3527_v54 = vld [vmem:[#allocation53_spill] sm:$0xff] }
 0x22e   : > { %v1356_v46 = vsel %vm1355_vm12, %v1351_v27, inf  ;;  %v1173_v30 = vand.u32 65535, %v3527_v54  ;;  %v1429_v54 = vand.u32 65535, %v2748_v7 }
 0x22f   : > { %v3109_v37 = vpop.xlane.xlu0 %1145  ;;  %1357 = vmin.xlane.f32.xlu1 %v1356_v46  ;;  %v3528_v46 = vld [vmem:[#allocation7_spill] sm:$0xff] }
 0x230   : > { %vm1147_vm14 = vcmp.eq.f32.partialorder %v3525_v24, %v3109_v37  ;;  %v3114_v63 = vpop.xlane.xlu1 %1129  ;;  %v1175_v36 = vcvt.s32.f32 %v1173_v30  ;;  %v1431_v30 = vcvt.s32.f32 %v1429_v54  ;;  %v3532_v54 = vld [vmem:[#allocation9_spill] sm:$0xff] }
 0x231   : > { %v1148_v25 = vsel %vm1147_vm14, %v1143_v3, inf  ;;  %vm1131_vm15 = vcmp.eq.f32.partialorder %v2694_v9, %v3114_v63 }
 0x232   : > { %1149 = vmin.xlane.f32.xlu0 %v1148_v25  ;;  %v1132_v31 = vsel %vm1131_vm15, %v1127_v19, inf  ;;  %v3530_v25 = vld [vmem:[#allocation3_spill] sm:$0xff] }
 0x233   : > { %v3119_v27 = vpop.xlane.xlu0 %1401  ;;  %1133 = vmin.xlane.f32.xlu1 %v1132_v31 }
 0x234   : > { %vm1403_vm12 = vcmp.eq.f32.partialorder %v3528_v46, %v3119_v27  ;;  %v3124_v24 = vpop.xlane.xlu1 %1385  ;;  %v3531_v46 = vld [vmem:[#allocation8_spill] sm:$0xff] }
 0x235   : > { %v1404_v3 = vsel %vm1403_vm12, %v1399_v45, inf  ;;  %vm1387_vm14 = vcmp.eq.f32.partialorder %v3530_v25, %v3124_v24  ;;  %v1413_v4 = vand.u32 65535, %v3531_v46 }
 0x236   : > { %1405 = vmin.xlane.f32.xlu0 %v1404_v3  ;;  %v1388_v9 = vsel %vm1387_vm14, %v1383_v61, inf }
 0x237   : > { %v3129_v19 = vpop.xlane.xlu0 %1177  ;;  %1389 = vmin.xlane.f32.xlu1 %v1388_v9  ;;  %v1415_v25 = vcvt.s32.f32 %v1413_v4  ;;  %v3534_v4 = vld [vmem:[#allocation56_spill] sm:$0xff] }
 0x238   : > { %vm1179_vm15 = vcmp.eq.f32.partialorder %v2746_v21, %v3129_v19  ;;  %v3134_v31 = vpop.xlane.xlu1 %1161 }
 0x239   : > { %v1180_v45 = vsel %vm1179_vm15, %v1175_v36, inf  ;;  %vm1163_vm12 = vcmp.eq.f32.partialorder %v2756_v62, %v3134_v31  ;;  %v1191_v36 = vcvt.s32.f32 %v1189_v59 }
 0x23a   : > { %1181 = vmin.xlane.f32.xlu0 %v1180_v45  ;;  %v1164_v3 = vsel %vm1163_vm12, %v1159_v13, inf  ;;  %v1445_v45 = vand.u32 65535, %v3532_v54 }
 0x23b   : > { %v3139_v61 = vpop.xlane.xlu0 %1433  ;;  %1165 = vmin.xlane.f32.xlu1 %v1164_v3  ;;  %v960_v3 = vcvt.f32.s32 %v2998_v33 }
 0x23c   : > { %vm1435_vm14 = vcmp.eq.f32.partialorder %v2761_v52, %v3139_v61  ;;  %v3143_v7 = vpop.xlane.xlu1 %1417  ;;  %v3533_v52 = vld [vmem:[#allocation10_spill] sm:$0xff]  ;;  %v1447_v32 = vcvt.s32.f32 %v1445_v45  ;;  %v992_v45 = vcvt.f32.s32 %v3009_v47  ;;  %v1232_v47 = vcvt.f32.s32 %v3024_v34 }
 0x23d   : > { %v1436_v21 = vsel %vm1435_vm14, %v1431_v30, inf  ;;  %vm1419_vm15 = vcmp.eq.f32.partialorder %v2767_v20, %v3143_v7 }
 0x23e   : > { %1437 = vmin.xlane.f32.xlu0 %v1436_v21  ;;  %v1420_v9 = vsel %vm1419_vm15, %v1415_v25, inf  ;;  %v961_v21 = vshll.u32 %v960_v3, 16  ;;  %v1216_v25 = vcvt.f32.s32 %v3003_v42  ;;  %v976_v42 = vcvt.f32.s32 %v3014_v10 }
 0x23f   : > { %1421 = vmin.xlane.f32.xlu1 %v1420_v9  ;;  %v1248_v3 = vcvt.f32.s32 %v3019_v51  ;;  %v1024_v10 = vcvt.f32.s32 %v3029_v58  ;;  %vm3552_vm15 = vcmp.lt.f32.partialorder %v2634_v18, inf }
 0x240   : > { %v3148_v62 = vpop.xlane.xlu1 %1193  ;;  %v1217_v54 = vshll.u32 %v1216_v25, 16 }
 0x241   : > { %vm1195_vm12 = vcmp.eq.f32.partialorder %v3533_v52, %v3148_v62  ;;  %v1025_v58 = vshll.u32 %v1024_v10, 16 }
 0x242   : > { %v1196_v13 = vsel %vm1195_vm12, %v1191_v36, inf  ;;  %vm3553_vm12 = vcmp.lt.f32.partialorder %v2606_v41, inf }
 0x243   : > { %1197 = vmin.xlane.f32.xlu1 %v1196_v13 }
 0x244   : > { %v3153_v46 = vpop.xlane.xlu1 %1449 }
 0x245   : > { %vm1451_vm14 = vcmp.eq.f32.partialorder %v3534_v4, %v3153_v46 }
 0x246   : > { %v1452_v20 = vsel %vm1451_vm14, %v1447_v32, inf }
 0x247   : > { %1453 = vmin.xlane.f32.xlu1 %v1452_v20  ;;  %v993_v20 = vshll.u32 %v992_v45, 16  ;;  %v1249_v45 = vshll.u32 %v1248_v3, 16 }
 0x289   : > { %v958_v30 = vpop.xlane.xlu0 %957 }
 0x28a   : > { %v959_v59 = vcvt.f32.s32 %v958_v30 }
 0x28c   : > { %v962_v9 = vadd.s32 %v961_v21, %v959_v59 }
 0x28e   : > { %v1214_v36 = vpop.xlane.xlu0 %1213  ;;  %v1523_v33 = vsel %vm1459_vm4, %v962_v9, 0  ;;  %v977_v9 = vshll.u32 %v976_v42, 16  ;;  %vm3541_vm4 = vcmp.lt.f32.partialorder %v2438_v5, inf }
 0x28f   : > { %v1215_v13 = vcvt.f32.s32 %v1214_v36  ;;  %1556 = vst.msk [vmem:[%s3163_s9] sm:$0xff] %vm1555_vm5, %v1523_v33 }
 0x291   : > { %v1218_v32 = vadd.s32 %v1217_v54, %v1215_v13 }
 0x292   : > { %v990_v4 = vpop.xlane.xlu0 %989 }
 0x293   : > { %v1539_v21 = vsel %vm1475_vm0, %v1218_v32, 0  ;;  %v991_v25 = vcvt.f32.s32 %v990_v4  ;;  %v1233_v32 = vshll.u32 %v1232_v47, 16  ;;  %v1008_v4 = vcvt.f32.s32 %v3034_v40 }
 0x294   : > { %1572 = vst.msk [vmem:[%s3163_s9 + $0x80] sm:$0xff] %vm1555_vm5, %v1539_v21  ;;  %v974_v59 = vpop.xlane.xlu1 %973  ;;  %v1264_v40 = vcvt.f32.s32 %v3044_v55  ;;  %vm3542_vm0 = vcmp.lt.f32.partialorder %v2492_v14, inf }
 0x295   : > { %v994_v36 = vadd.s32 %v993_v20, %v991_v25  ;;  %v975_v52 = vcvt.f32.s32 %v974_v59  ;;  %v1280_v59 = vcvt.f32.s32 %v3039_v39  ;;  %v1056_v39 = vcvt.f32.s32 %v3049_v49 }
 0x296   : > { %v1246_v54 = vpop.xlane.xlu0 %1245 }
 0x297   : > { %v1525_v51 = vsel %vm1461_vm1, %v994_v36, 0  ;;  %v978_v13 = vadd.s32 %v977_v9, %v975_v52  ;;  %v1247_v30 = vcvt.f32.s32 %v1246_v54  ;;  %vm3543_vm1 = vcmp.lt.f32.partialorder %v2464_v11, inf }
 0x298   : > { %1558 = vst.msk [vmem:[%s3163_s9 + $0x10] sm:$0xff] %vm1555_vm5, %v1525_v51  ;;  %v1230_v34 = vpop.xlane.xlu1 %1229 }
 0x299   : > { %v1524_v20 = vsel %vm1460_vm2, %v978_v13, 0  ;;  %v1250_v21 = vadd.s32 %v1249_v45, %v1247_v30  ;;  %v1231_v25 = vcvt.f32.s32 %v1230_v34  ;;  %v1009_v45 = vshll.u32 %v1008_v4, 16 }
 0x29a   : > { %1557 = vst.msk [vmem:[%s3163_s9 + $0x8] sm:$0xff] %vm1555_vm5, %v1524_v20  ;;  %v1022_v3 = vpop.xlane.xlu0 %1021  ;;  %v1265_v20 = vshll.u32 %v1264_v40, 16  ;;  %vm3544_vm2 = vcmp.lt.f32.partialorder %v2522_v48, inf }
 0x29b   : > { %v1541_v47 = vsel %vm1477_vm3, %v1250_v21, 0  ;;  %v1234_v36 = vadd.s32 %v1233_v32, %v1231_v25  ;;  %v1023_v52 = vcvt.f32.s32 %v1022_v3  ;;  %v1281_v32 = vshll.u32 %v1280_v59, 16 }
 0x29c   : > { %1574 = vst.msk [vmem:[%s3163_s9 + $0x90] sm:$0xff] %vm1555_vm5, %v1541_v47  ;;  %v1006_v54 = vpop.xlane.xlu1 %1005  ;;  %v1040_v21 = vcvt.f32.s32 %v3054_v57  ;;  %v1057_v3 = vshll.u32 %v1056_v39, 16  ;;  %v1312_v59 = vcvt.f32.s32 %v3059_v22  ;;  %v1296_v57 = vcvt.f32.s32 %v3064_v50 }
 0x29d   : > { %v1540_v10 = vsel %vm1476_vm6, %v1234_v36, 0  ;;  %v1026_v51 = vadd.s32 %v1025_v58, %v1023_v52  ;;  %v1007_v13 = vcvt.f32.s32 %v1006_v54  ;;  %v1088_v22 = vcvt.f32.s32 %v3069_v43 }
 0x29e   : > { %1573 = vst.msk [vmem:[%s3163_s9 + $0x88] sm:$0xff] %vm1555_vm5, %v1540_v10  ;;  %v1278_v30 = vpop.xlane.xlu0 %1277  ;;  %v1041_v52 = vshll.u32 %v1040_v21, 16  ;;  %v1313_v33 = vshll.u32 %v1312_v59, 16  ;;  %v1072_v39 = vcvt.f32.s32 %v3074_v0  ;;  %v1328_v0 = vcvt.f32.s32 %v3084_v8 }
 0x29f   : > { %v1527_v34 = vsel %vm1463_vm7, %v1026_v51, 0  ;;  %v1010_v55 = vadd.s32 %v1009_v45, %v1007_v13  ;;  %v1279_v42 = vcvt.f32.s32 %v1278_v30  ;;  %v1297_v13 = vshll.u32 %v1296_v57, 16 }
 0x2a0   : > { %1560 = vst.msk [vmem:[%s3163_s9 + $0x20] sm:$0xff] %vm1555_vm5, %v1527_v34  ;;  %v1262_v4 = vpop.xlane.xlu1 %1261  ;;  %v1089_v34 = vshll.u32 %v1088_v22, 16  ;;  %v1073_v21 = vshll.u32 %v1072_v39, 16  ;;  %vm3545_vm3 = vcmp.lt.f32.partialorder %v2494_v17, inf  ;;  %vm3546_vm6 = vcmp.lt.f32.partialorder %v2548_v26, inf }
 0x2a1   : > { %v1526_v25 = vsel %vm1462_vm8, %v1010_v55, 0  ;;  %v1282_v49 = vadd.s32 %v1281_v32, %v1279_v42  ;;  %v1263_v58 = vcvt.f32.s32 %v1262_v4  ;;  %v1344_v55 = vcvt.f32.s32 %v3079_v53 }
 0x2a2   : > { %1559 = vst.msk [vmem:[%s3163_s9 + $0x18] sm:$0xff] %vm1555_vm5, %v1526_v25  ;;  %v1054_v60 = vpop.xlane.xlu0 %1053  ;;  %v1120_v53 = vcvt.f32.s32 %v3089_v16  ;;  %vm3547_vm7 = vcmp.lt.f32.partialorder %v2520_v23, inf  ;;  %vm3548_vm8 = vcmp.lt.f32.partialorder %v2578_v6, inf  ;;  %v1136_v39 = vcvt.f32.s32 %v3114_v63 }
 0x2a3   : > { %v1543_v9 = vsel %vm1479_vm9, %v1282_v49, 0  ;;  %v1266_v47 = vadd.s32 %v1265_v20, %v1263_v58  ;;  %v1055_v36 = vcvt.f32.s32 %v1054_v60  ;;  %vm3549_vm9 = vcmp.lt.f32.partialorder %v2550_v29, inf }
 0x2a4   : > { %1576 = vst.msk [vmem:[%s3163_s9 + $0xa0] sm:$0xff] %vm1555_vm5, %v1543_v9  ;;  %v1038_v56 = vpop.xlane.xlu1 %1037  ;;  %v1329_v9 = vshll.u32 %v1328_v0, 16  ;;  %v1392_v63 = vcvt.f32.s32 %v3124_v24 }
 0x2a5   : > { %v1542_v40 = vsel %vm1478_vm10, %v1266_v47, 0  ;;  %v1058_v54 = vadd.s32 %v1057_v3, %v1055_v36  ;;  %v1039_v45 = vcvt.f32.s32 %v1038_v56  ;;  %v1345_v3 = vshll.u32 %v1344_v55, 16 }
 0x2a6   : > { %1575 = vst.msk [vmem:[%s3163_s9 + $0x98] sm:$0xff] %vm1555_vm5, %v1542_v40  ;;  %v1310_v2 = vpop.xlane.xlu0 %1309  ;;  %v1104_v47 = vcvt.f32.s32 %v3094_v44  ;;  %v1121_v56 = vshll.u32 %v1120_v53, 16  ;;  %v1360_v44 = vcvt.f32.s32 %v3104_v12  ;;  %vm3550_vm10 = vcmp.lt.f32.partialorder %v2604_v38, inf }
 0x2a7   : > { %v1529_v10 = vsel %vm1465_vm11, %v1058_v54, 0  ;;  %v1042_v50 = vadd.s32 %v1041_v52, %v1039_v45  ;;  %v1311_v51 = vcvt.f32.s32 %v1310_v2  ;;  %v1376_v52 = vcvt.f32.s32 %v3099_v15 }
 0x2a8   : > { %1562 = vst.msk [vmem:[%s3163_s9 + $0x30] sm:$0xff] %vm1555_vm5, %v1529_v10  ;;  %v1294_v1 = vpop.xlane.xlu1 %1293  ;;  %v1105_v22 = vshll.u32 %v1104_v47, 16  ;;  %v1152_v15 = vcvt.f32.s32 %v3109_v37  ;;  %vm3551_vm11 = vcmp.lt.f32.partialorder %v2576_v35, inf  ;;  %v1168_v53 = vcvt.f32.s32 %v3134_v31 }
 0x2a9   : > { %v1528_v30 = vsel %vm3541_vm4, %v1042_v50, 0  ;;  %v1314_v43 = vadd.s32 %v1313_v33, %v1311_v51  ;;  %v1295_v32 = vcvt.f32.s32 %v1294_v1  ;;  %v1377_v50 = vshll.u32 %v1376_v52, 16 }
 0x2aa   : > { %1561 = vst.msk [vmem:[%s3163_s9 + $0x28] sm:$0xff] %vm1555_vm5, %v1528_v30  ;;  %v1086_v28 = vpop.xlane.xlu0 %1085  ;;  %v1361_v1 = vshll.u32 %v1360_v44, 16  ;;  %v1424_v31 = vcvt.f32.s32 %v3143_v7 }
 0x2ab   : > { %v1545_v42 = vsel %vm3542_vm0, %v1314_v43, 0  ;;  %v1298_v20 = vadd.s32 %v1297_v13, %v1295_v32  ;;  %v1087_v4 = vcvt.f32.s32 %v1086_v28  ;;  %v1153_v32 = vshll.u32 %v1152_v15, 16 }
 0x2ac   : > { %1578 = vst.msk [vmem:[%s3163_s9 + $0xb0] sm:$0xff] %vm1555_vm5, %v1545_v42  ;;  %v1070_v5 = vpop.xlane.xlu1 %1069  ;;  %v1425_v44 = vshll.u32 %v1424_v31, 16 }
 0x2ad   : > { %v1544_v25 = vsel %vm3543_vm1, %v1298_v20, 0  ;;  %v1090_v49 = vadd.s32 %v1089_v34, %v1087_v4  ;;  %v1071_v58 = vcvt.f32.s32 %v1070_v5  ;;  %v1408_v34 = vcvt.f32.s32 %v3119_v27 }
 0x2ae   : > { %1577 = vst.msk [vmem:[%s3163_s9 + $0xa8] sm:$0xff] %vm1555_vm5, %v1544_v25  ;;  %v1342_v14 = vpop.xlane.xlu0 %1341  ;;  %v1137_v20 = vshll.u32 %v1136_v39, 16  ;;  %v1184_v27 = vcvt.f32.s32 %v3129_v19 }
 0x2af   : > { %v1531_v60 = vsel %vm3544_vm2, %v1090_v49, 0  ;;  %v1074_v8 = vadd.s32 %v1073_v21, %v1071_v58  ;;  %v1343_v59 = vcvt.f32.s32 %v1342_v14  ;;  %v1409_v21 = vshll.u32 %v1408_v34, 16 }
 0x2b0   : > { %1564 = vst.msk [vmem:[%s3163_s9 + $0x40] sm:$0xff] %vm1555_vm5, %v1531_v60  ;;  %v1326_v11 = vpop.xlane.xlu1 %1325  ;;  %v1393_v58 = vshll.u32 %v1392_v63, 16  ;;  %v1185_v60 = vshll.u32 %v1184_v27, 16 }
 0x2b1   : > { %v1530_v36 = vsel %vm3545_vm3, %v1074_v8, 0  ;;  %v1346_v16 = vadd.s32 %v1345_v3, %v1343_v59  ;;  %v1327_v57 = vcvt.f32.s32 %v1326_v11  ;;  %v1440_v8 = vcvt.f32.s32 %v3139_v61  ;;  %v3554_v59 = vld [vmem:[#allocation45_spill] sm:$0xff] }
 0x2b2   : > { %1563 = vst.msk [vmem:[%s3163_s9 + $0x38] sm:$0xff] %vm1555_vm5, %v1530_v36  ;;  %v1118_v48 = vpop.xlane.xlu0 %1117  ;;  %vm3555_vm14 = vcmp.lt.f32.partialorder %v3554_v59, inf  ;;  %v1169_v36 = vshll.u32 %v1168_v53, 16 }
 0x2b3   : > { %v1547_v40 = vsel %vm3546_vm6, %v1346_v16, 0  ;;  %v1330_v54 = vadd.s32 %v1329_v9, %v1327_v57  ;;  %v1119_v45 = vcvt.f32.s32 %v1118_v48  ;;  %v3556_v16 = vld [vmem:[#allocation40_spill] sm:$0xff]  ;;  %v1441_v52 = vshll.u32 %v1440_v8, 16 }
 0x2b4   : > { %1580 = vst.msk [vmem:[%s3163_s9 + $0xc0] sm:$0xff] %vm1555_vm5, %v1547_v40  ;;  %v1102_v17 = vpop.xlane.xlu1 %1101  ;;  %vm3557_vm4 = vcmp.lt.f32.partialorder %v3556_v16, inf  ;;  %v3558_v40 = vld [vmem:[#allocation50_spill] sm:$0xff] }
 0x2b5   : > { %v1546_v2 = vsel %vm3547_vm7, %v1330_v54, 0  ;;  %v1122_v33 = vadd.s32 %v1121_v56, %v1119_v45  ;;  %v1103_v10 = vcvt.f32.s32 %v1102_v17  ;;  %vm3559_vm0 = vcmp.lt.f32.partialorder %v3558_v40, inf }
 0x2b6   : > { %1579 = vst.msk [vmem:[%s3163_s9 + $0xb8] sm:$0xff] %vm1555_vm5, %v1546_v2  ;;  %v1374_v26 = vpop.xlane.xlu0 %1373  ;;  %v3560_v2 = vld [vmem:[#allocation46_spill] sm:$0xff] }
 0x2b7   : > { %v1533_v51 = vsel %vm3548_vm8, %v1122_v33, 0  ;;  %v1106_v12 = vadd.s32 %v1105_v22, %v1103_v10  ;;  %v1375_v13 = vcvt.f32.s32 %v1374_v26  ;;  %v1200_v22 = vcvt.f32.s32 %v3148_v62  ;;  %v3563_v62 = vld [vmem:[#allocation4_spill] sm:$0xff] }
 0x2b8   : > { %1566 = vst.msk [vmem:[%s3163_s9 + $0x50] sm:$0xff] %vm1555_vm5, %v1533_v51  ;;  %v1358_v23 = vpop.xlane.xlu1 %1357  ;;  %vm3561_vm1 = vcmp.lt.f32.partialorder %v3560_v2, inf  ;;  %vm3564_vm2 = vcmp.lt.f32.partialorder %v3563_v62, inf }
 0x2b9   : > { %v1532_v30 = vsel %vm3549_vm9, %v1106_v12, 0  ;;  %v1378_v37 = vadd.s32 %v1377_v50, %v1375_v13  ;;  %v1359_v43 = vcvt.f32.s32 %v1358_v23  ;;  %v1201_v13 = vshll.u32 %v1200_v22, 16 }
 0x2ba   : > { %1565 = vst.msk [vmem:[%s3163_s9 + $0x48] sm:$0xff] %vm1555_vm5, %v1532_v30 }
 0x2bb   : > { %v1150_v6 = vpop.xlane.xlu0 %1149  ;;  %v1549_v28 = vsel %vm3550_vm10, %v1378_v37, 0  ;;  %v1362_v55 = vadd.s32 %v1361_v1, %v1359_v43  ;;  %v1456_v1 = vcvt.f32.s32 %v3153_v46 }
 0x2bc   : > { %v1151_v42 = vcvt.f32.s32 %v1150_v6  ;;  %1582 = vst.msk [vmem:[%s3163_s9 + $0xd0] sm:$0xff] %vm1555_vm5, %v1549_v28  ;;  %v1134_v29 = vpop.xlane.xlu1 %1133 }
 0x2bd   : > { %v1548_v4 = vsel %vm3551_vm11, %v1362_v55, 0  ;;  %v1135_v5 = vcvt.f32.s32 %v1134_v29  ;;  %v1457_v43 = vshll.u32 %v1456_v1, 16  ;;  %v3567_v55 = vld [vmem:[#allocation55_spill] sm:$0xff] }
 0x2be   : > { %v1154_v0 = vadd.s32 %v1153_v32, %v1151_v42  ;;  %1581 = vst.msk [vmem:[%s3163_s9 + $0xc8] sm:$0xff] %vm1555_vm5, %v1548_v4  ;;  %v3565_v32 = vld [vmem:[#allocation6_spill] sm:$0xff] }
 0x2bf   : > { %v1406_v38 = vpop.xlane.xlu0 %1405  ;;  %v1138_v24 = vadd.s32 %v1137_v20, %v1135_v5  ;;  %vm3566_vm3 = vcmp.lt.f32.partialorder %v3565_v32, inf }
 0x2c0   : > { %v1535_v25 = vsel %vm3552_vm15, %v1154_v0, 0  ;;  %v1407_v49 = vcvt.f32.s32 %v1406_v38  ;;  %v1390_v35 = vpop.xlane.xlu1 %1389 }
 0x2c1   : > { %1568 = vst.msk [vmem:[%s3163_s9 + $0x60] sm:$0xff] %vm1555_vm5, %v1535_v25  ;;  %v1534_v14 = vsel %vm3553_vm12, %v1138_v24, 0  ;;  %v1391_v3 = vcvt.f32.s32 %v1390_v35 }
 0x2c2   : > { %v1410_v19 = vadd.s32 %v1409_v21, %v1407_v49  ;;  %1567 = vst.msk [vmem:[%s3163_s9 + $0x58] sm:$0xff] %vm1555_vm5, %v1534_v14 }
 0x2c3   : > { %v1182_v18 = vpop.xlane.xlu0 %1181  ;;  %v1394_v11 = vadd.s32 %v1393_v58, %v1391_v3 }
 0x2c4   : > { %v1551_v9 = vsel %vm3555_vm14, %v1410_v19, 0  ;;  %v1183_v47 = vcvt.f32.s32 %v1182_v18  ;;  %v1166_v41 = vpop.xlane.xlu1 %1165 }
 0x2c5   : > { %1584 = vst.msk [vmem:[%s3163_s9 + $0xe0] sm:$0xff] %vm1555_vm5, %v1551_v9  ;;  %v1550_v57 = vsel %vm3557_vm4, %v1394_v11, 0  ;;  %v1167_v48 = vcvt.f32.s32 %v1166_v41 }
 0x2c6   : > { %v1186_v56 = vadd.s32 %v1185_v60, %v1183_v47  ;;  %1583 = vst.msk [vmem:[%s3163_s9 + $0xd8] sm:$0xff] %vm1555_vm5, %v1550_v57 }
 0x2c7   : > { %v1438_v61 = vpop.xlane.xlu0 %1437  ;;  %v1170_v45 = vadd.s32 %v1169_v36, %v1167_v48 }
 0x2c8   : > { %v1537_v54 = vsel %vm3559_vm0, %v1186_v56, 0  ;;  %v1439_v7 = vcvt.f32.s32 %v1438_v61  ;;  %v1422_v17 = vpop.xlane.xlu1 %1421 }
 0x2c9   : > { %1570 = vst.msk [vmem:[%s3163_s9 + $0x70] sm:$0xff] %vm1555_vm5, %v1537_v54  ;;  %v1536_v33 = vsel %vm3561_vm1, %v1170_v45, 0  ;;  %v1423_v15 = vcvt.f32.s32 %v1422_v17 }
 0x2ca   : > { %v1442_v10 = vadd.s32 %v1441_v52, %v1439_v7  ;;  %1569 = vst.msk [vmem:[%s3163_s9 + $0x68] sm:$0xff] %vm1555_vm5, %v1536_v33 }
 0x2cb   : > { %v1426_v51 = vadd.s32 %v1425_v44, %v1423_v15 }
 0x2cc   : > { %v1553_v50 = vsel %vm1489_vm13, %v1442_v10, 0  ;;  %v1198_v12 = vpop.xlane.xlu1 %1197  ;;  %vm3568_vm13 = vcmp.lt.f32.partialorder %v3567_v55, inf }
 0x2cd   : > { %1586 = vst.msk [vmem:[%s3163_s9 + $0xf0] sm:$0xff] %vm1555_vm5, %v1553_v50  ;;  %v1552_v23 = vsel %vm3564_vm2, %v1426_v51, 0  ;;  %v1199_v39 = vcvt.f32.s32 %v1198_v12 }
 0x2ce   : > { %1585 = vst.msk [vmem:[%s3163_s9 + $0xe8] sm:$0xff] %vm1555_vm5, %v1552_v23 }
 0x2cf   : > { %v1202_v30 = vadd.s32 %v1201_v13, %v1199_v39 }
 0x2d0   : > { %v1454_v37 = vpop.xlane.xlu1 %1453 }
 0x2d1   : > { %v1538_v6 = vsel %vm3566_vm3, %v1202_v30, 0  ;;  %v1455_v34 = vcvt.f32.s32 %v1454_v37 }
 0x2d2   : > { %1571 = vst.msk [vmem:[%s3163_s9 + $0x78] sm:$0xff] %vm1555_vm5, %v1538_v6 }
 0x2d3   : > { %v1458_v28 = vadd.s32 %v1457_v43, %v1455_v34 }
 0x2d5   : > { %v1554_v42 = vsel %vm3568_vm13, %v1458_v28, 0 }
 0x2d6   : > { %1587 = vst.msk [vmem:[%s3163_s9 + $0xf8] sm:$0xff] %vm1555_vm5, %v1554_v42 }
 0x2d7 PF: > { %s15_s17 = sadd.s32 1, %s1963_s17   ;;  %s3569_s15 = smov %s1959_s16 }
 0x2d8   : > { %p12_p5 = scmp.ge.s32.totalorder %s15_s17, 4   ;;  %s3570_s16 = smov %s3572_s18 }
 0x2da   :  { %14 = sbr.rel (!%p12_p5) target bundleno = 2 (0x2), region = 80 }

</bundles_post_ra>
